<compile_context>
chip_gen: v7x
topology: tpu7x:2x2x1
jax: 0.10.0
libtpu: 0.0.40
codegen_flags: <defaults>
</compile_context>

<pallas_src>
import functools
import math
import numpy as np

import jax
import jax.numpy as jnp
from jax.experimental import pallas as pl
from jax.experimental.pallas import tpu as pltpu


def _round_up(x, m):
    return ((x + m - 1) // m) * m


def _choose_tile(dim, max_tile):
    """Pick (tile, padded_dim) for a lane/reduction dim.

    Prefer the full dim (single block, no padding — legal because block ==
    array dim), else the largest multiple-of-128 divisor <= max_tile, else
    pad up to a multiple of a 128-aligned tile."""
    if dim <= max_tile:
        return dim, dim
    t = (max_tile // 128) * 128
    while t >= 128:
        if dim % t == 0:
            return t, dim
        t -= 128
    t = (max_tile // 128) * 128
    return t, _round_up(dim, t)


# ----------------------------------------------------------------------------
# Fused (LayerNorm) + matmul + bias (+GELU) (+residual) kernel
# ----------------------------------------------------------------------------
def _matmul_kernel(*refs, activation, has_residual, fuse_ln, multi_k, eps):
    it = iter(refs)
    x_ref = next(it)
    if fuse_ln:
        g_ref = next(it)
        bln_ref = next(it)
    w_ref = next(it)
    b_ref = next(it)
    r_ref = next(it) if has_residual else None
    o_ref = next(it)
    acc_ref = next(it) if multi_k else None

    x = x_ref[...]
    if fuse_ln:
        # LayerNorm prologue over the full feature dim (requires tk == K).
        xf = x.astype(jnp.float32)
        mu = jnp.mean(xf, axis=-1, keepdims=True)
        var = jnp.mean(jnp.square(xf - mu), axis=-1, keepdims=True)
        x = (xf - mu) * jax.lax.rsqrt(var + eps) * g_ref[...] + bln_ref[...]
    x = x.astype(jnp.bfloat16)

    def epilogue(acc):
        y = acc + b_ref[...]                               # (1, tn) broadcasts
        if activation == "gelu":
            # TODO(synk): PyTorch nn.GELU defaults to exact erf GELU; tanh
            # approximation used here (proven Mosaic lowering, EUP tanh).
            y = jax.nn.gelu(y, approximate=True)
        if r_ref is not None:
            y = y + r_ref[...].astype(jnp.float32)
        o_ref[...] = y.astype(o_ref.dtype)

    if multi_k:
        k = pl.program_id(2)

        @pl.when(k == 0)
        def _():
            acc_ref[...] = jnp.zeros_like(acc_ref)

        acc_ref[...] += jnp.dot(x, w_ref[...],
                                preferred_element_type=jnp.float32)

        @pl.when(k == pl.num_programs(2) - 1)
        def _():
            epilogue(acc_ref[...])
    else:
        # Single reduction step: write the dot result straight to the output
        # (no accumulator scratch round trip).
        epilogue(jnp.dot(x, w_ref[...], preferred_element_type=jnp.float32))


def matmul_bias(x, w, b, *, activation=None, residual=None, ln=None,
                eps=1e-5, out_dtype=jnp.float32,
                tm=512, max_tn=640, max_tk=2048):
    """x:(M,K) @ w:(K,N) + b:(N,), with optional fused LayerNorm prologue
    (ln=(gamma, beta)), fused GELU, and fused residual add.

    MXU operands in bf16 (f32 accumulation). Tiles are divisor-aligned so
    only M is padded (to a multiple of 8)."""
    M, K = x.shape
    N = w.shape[1]
    fuse_ln = ln is not None

    tm = min(tm, _round_up(M, 8))
    Mp = _round_up(M, tm)

    if fuse_ln:
        tk, Kp = K, K                      # LN needs the whole feature dim
    else:
        tk, Kp = _choose_tile(K, max_tk)
    tn, Np = _choose_tile(N, max_tn)
    multi_k = (Kp // tk) > 1

    xp = x if fuse_ln else x.astype(jnp.bfloat16)
    if (Mp, Kp) != (M, K):
        xp = jnp.pad(xp, ((0, Mp - M), (0, Kp - K)))
    wp = w.astype(jnp.bfloat16)            # no-op: weights pre-cast at init
    if (Kp, Np) != (K, N):
        wp = jnp.pad(wp, ((0, Kp - K), (0, Np - N)))
    bp = b.astype(jnp.float32)
    if Np != N:
        bp = jnp.pad(bp, (0, Np - N))
    bp = bp.reshape(1, Np)

    if multi_k:
        idx_x = lambda i, j, k: (i, k)
        idx_w = lambda i, j, k: (k, j)
        idx_o = lambda i, j, k: (i, j)
        idx_b = lambda i, j, k: (0, j)
        idx_v = lambda i, j, k: (0, 0)
        grid = (Mp // tm, Np // tn, Kp // tk)
        sem = ("parallel", "parallel", "arbitrary")
        scratch = [pltpu.VMEM((tm, tn), jnp.float32)]
    else:
        idx_x = lambda i, j: (i, 0)
        idx_w = lambda i, j: (0, j)
        idx_o = lambda i, j: (i, j)
        idx_b = lambda i, j: (0, j)
        idx_v = lambda i, j: (0, 0)
        grid = (Mp // tm, Np // tn)
        sem = ("parallel", "parallel")
        scratch = []

    in_specs = [pl.BlockSpec((tm, tk), idx_x)]
    operands = [xp]
    if fuse_ln:
        g, beta = ln
        in_specs += [pl.BlockSpec((1, K), idx_v), pl.BlockSpec((1, K), idx_v)]
        operands += [g.reshape(1, K).astype(jnp.float32),
                     beta.reshape(1, K).astype(jnp.float32)]
    in_specs += [pl.BlockSpec((tk, tn), idx_w), pl.BlockSpec((1, tn), idx_b)]
    operands += [wp, bp]
    if residual is not None:
        rp = residual
        if (Mp, Np) != (M, N):
            rp = jnp.pad(rp, ((0, Mp - M), (0, Np - N)))
        in_specs.append(pl.BlockSpec((tm, tn), idx_o))
        operands.append(rp)

    out = pl.pallas_call(
        functools.partial(_matmul_kernel, activation=activation,
                          has_residual=residual is not None,
                          fuse_ln=fuse_ln, multi_k=multi_k, eps=eps),
        out_shape=jax.ShapeDtypeStruct((Mp, Np), out_dtype),
        grid=grid,
        in_specs=in_specs,
        out_specs=pl.BlockSpec((tm, tn), idx_o),
        scratch_shapes=scratch,
        compiler_params=pltpu.CompilerParams(
            dimension_semantics=sem,
            vmem_limit_bytes=32 * 1024 * 1024),
    )(*operands)

    if (Mp, Np) != (M, N):
        out = out[:M, :N]
    return out


# ----------------------------------------------------------------------------
# Flash attention kernel (online softmax; per-batch / q-tile / kv-tile grid)
# ----------------------------------------------------------------------------
def _flash_attn_kernel(q_ref, k_ref, v_ref, bias_ref, o_ref,
                       m_sc, l_sc, acc_sc, *, scale):
    kv = pl.program_id(2)

    @pl.when(kv == 0)
    def _():
        m_sc[...] = jnp.full_like(m_sc, -jnp.inf)
        l_sc[...] = jnp.zeros_like(l_sc)
        acc_sc[...] = jnp.zeros_like(acc_sc)

    q = q_ref[0]                                   # (H, tq, Dh) bf16
    k = k_ref[0]                                   # (H, tk, Dh) bf16
    s = jnp.einsum("hqd,hkd->hqk", q, k,
                   preferred_element_type=jnp.float32) * scale
    s = s + bias_ref[...]                          # (1, 1, tk) key-mask bias

    m_prev = m_sc[...]                             # (H, tq, 128) lane-dense
    s_max = jnp.max(s, axis=-1, keepdims=True)     # (H, tq, 1)
    m_new = jnp.maximum(m_prev, s_max)             # (H, tq, 128)
    alpha = jnp.exp(m_prev - m_new)
    p = jnp.exp(s - m_new[:, :, :1])               # (H, tq, tk)
    l_sc[...] = alpha * l_sc[...] + jnp.sum(p, axis=-1, keepdims=True)
    acc_sc[...] = alpha[:, :, :1] * acc_sc[...] + jnp.einsum(
        "hqk,hkd->hqd", p.astype(v_ref.dtype), v_ref[0],
        preferred_element_type=jnp.float32)
    m_sc[...] = m_new

    @pl.when(kv == pl.num_programs(2) - 1)
    def _():
        inv_l = pl.reciprocal(l_sc[...], approx=True)
        o_ref[0] = (acc_sc[...] * inv_l[:, :, :1]).astype(o_ref.dtype)


def mha_flash(q, k, v, mask_bias, *, tq=256, tk=256):
    """q/k/v: (B, H, S, Dh) bf16; mask_bias: (B, 1, S) additive f32."""
    B, H, S, Dh = q.shape
    scale = 1.0 / float(np.sqrt(Dh))

    Sp = _round_up(S, 8)
    tq = min(tq, Sp)
    tk = min(tk, Sp)
    Sp = _round_up(Sp, (tq * tk) // math.gcd(tq, tk))
    if Sp != S:
        pad = Sp - S
        q = jnp.pad(q, ((0, 0), (0, 0), (0, pad), (0, 0)))
        k = jnp.pad(k, ((0, 0), (0, 0), (0, pad), (0, 0)))
        v = jnp.pad(v, ((0, 0), (0, 0), (0, pad), (0, 0)))
        mask_bias = jnp.pad(mask_bias, ((0, 0), (0, 0), (0, pad)),
                            constant_values=-1e9)

    out = pl.pallas_call(
        functools.partial(_flash_attn_kernel, scale=scale),
        out_shape=jax.ShapeDtypeStruct((B, H, Sp, Dh), jnp.bfloat16),
        grid=(B, Sp // tq, Sp // tk),
        in_specs=[
            pl.BlockSpec((1, H, tq, Dh), lambda b, qi, ki: (b, 0, qi, 0)),
            pl.BlockSpec((1, H, tk, Dh), lambda b, qi, ki: (b, 0, ki, 0)),
            pl.BlockSpec((1, H, tk, Dh), lambda b, qi, ki: (b, 0, ki, 0)),
            pl.BlockSpec((1, 1, tk), lambda b, qi, ki: (b, 0, ki)),
        ],
        out_specs=pl.BlockSpec((1, H, tq, Dh), lambda b, qi, ki: (b, 0, qi, 0)),
        scratch_shapes=[
            pltpu.VMEM((H, tq, 128), jnp.float32),   # running max (lane-dense)
            pltpu.VMEM((H, tq, 128), jnp.float32),   # running denom
            pltpu.VMEM((H, tq, Dh), jnp.float32),    # output accumulator
        ],
        compiler_params=pltpu.CompilerParams(
            dimension_semantics=("parallel", "parallel", "arbitrary"),
            vmem_limit_bytes=48 * 1024 * 1024),
    )(q, k, v, mask_bias)

    return out[:, :, :S] if Sp != S else out


# ----------------------------------------------------------------------------
# Glue (layout plumbing only — all compute lives in the kernels above)
# ----------------------------------------------------------------------------
def conv1d_gelu(x_btc, w2, b, stride, out_dtype=jnp.float32):
    """Conv1d(kernel=3, padding=1) + GELU via channels-last im2col + matmul.
    x_btc: (B, T, Cin); w2: (3*Cin, Cout) bf16, rows ordered [tap, cin]."""
    B, T, Cin = x_btc.shape
    Cout = w2.shape[1]
    K = 3
    xp = jnp.pad(x_btc, ((0, 0), (1, 1), (0, 0)))
    T_out = (T + 2 - K) // stride + 1
    # TODO(synk): the im2col concatenate materializes a 3x activation copy;
    # an in-kernel 3-tap accumulation would avoid it for conv2.
    patches = jnp.concatenate(
        [xp[:, s:s + stride * T_out:stride, :] for s in range(K)], axis=-1)
    y = matmul_bias(patches.reshape(B * T_out, K * Cin), w2, b,
                    activation="gelu", out_dtype=out_dtype)
    return y.reshape(B, T_out, Cout)


def sinusoids(length, channels, max_timescale=10000.0):
    assert channels % 2 == 0
    log_ti = np.log(max_timescale) / (channels // 2 - 1)
    inv = jnp.exp(-log_ti * jnp.arange(channels // 2, dtype=jnp.float32))
    t = jnp.arange(length, dtype=jnp.float32)[:, None] * inv[None, :]
    return jnp.concatenate([jnp.sin(t), jnp.cos(t)], axis=1)     # (length, C)


def encoder_layer(x, mask_bias, p, heads, eps):
    """Pre-LN transformer encoder layer. x: (B, S, D) f32."""
    B, S, D = x.shape
    Dh = D // heads
    x2d = x.reshape(B * S, D)

    # --- self-attention: LN fused into the QKV matmul; residual fused into
    #     the output projection. One transpose in / one out for head layout.
    qkv = matmul_bias(x2d, p["w_qkv"], p["b_qkv"],
                      ln=(p["ln1_g"], p["ln1_b"]), eps=eps,
                      out_dtype=jnp.bfloat16)                    # (B*S, 3D)
    qkv = jnp.transpose(qkv.reshape(B, S, 3, heads, Dh), (2, 0, 3, 1, 4))
    a = mha_flash(qkv[0], qkv[1], qkv[2], mask_bias)             # (B,H,S,Dh)
    a = jnp.transpose(a, (0, 2, 1, 3)).reshape(B * S, D)
    x2d = matmul_bias(a, p["wo"], p["bo"], residual=x2d,
                      out_dtype=jnp.float32)   # dropout == identity (inference)

    # --- feed-forward: LN fused into FF1, residual fused into FF2 ---
    h = matmul_bias(x2d, p["w_ff1"], p["b_ff1"],
                    ln=(p["ln2_g"], p["ln2_b"]), eps=eps,
                    activation="gelu", out_dtype=jnp.bfloat16)
    x2d = matmul_bias(h, p["w_ff2"], p["b_ff2"], residual=x2d,
                      out_dtype=jnp.float32)
    return x2d.reshape(B, S, D)


def encoder_forward(params, x, padding_mask, *, heads, eps):
    """x: (B, n_mels, T) f32; padding_mask: (B, S) bool, True = padded key."""
    xt = jnp.transpose(x, (0, 2, 1))                              # (B, T, n_mels)
    h = conv1d_gelu(xt, params["conv1_w"], params["conv1_b"], stride=1,
                    out_dtype=jnp.bfloat16)                       # (B, T, D)
    h = conv1d_gelu(h, params["conv2_w"], params["conv2_b"], stride=2,
                    out_dtype=jnp.float32)                        # (B, S, D)
    B, S, D = h.shape
    h = h + sinusoids(S, D)[None, :, :]
    mask_bias = jnp.where(padding_mask, -1e9, 0.0).astype(jnp.float32)
    mask_bias = mask_bias.reshape(B, 1, S)
    for lp in params["layers"]:
        h = encoder_layer(h, mask_bias, lp, heads, eps)
    return h


# ----------------------------------------------------------------------------
# Deterministic parameter init (synthetic weights; weights are stored already
# bf16-cast and reshaped to (K, N) matmul layout — a real checkpoint would be
# converted once at load time, not per forward).
# ----------------------------------------------------------------------------
def init_params(key, n_layers, n_mels, d_model, d_ff):
    keys = jax.random.split(key, 2 + n_layers)

    def w(k, shape):
        return (0.02 * jax.random.normal(k, shape, jnp.float32)
                ).astype(jnp.bfloat16)

    params = {
        "conv1_w": w(keys[0], (3 * n_mels, d_model)),   # rows = [tap, cin]
        "conv1_b": jnp.zeros((d_model,), jnp.float32),
        "conv2_w": w(keys[1], (3 * d_model, d_model)),
        "conv2_b": jnp.zeros((d_model,), jnp.float32),
        "layers": [],
    }
    for i in range(n_layers):
        lk = jax.random.split(keys[2 + i], 4)
        params["layers"].append({
            "ln1_g": jnp.ones((d_model,), jnp.float32),
            "ln1_b": jnp.zeros((d_model,), jnp.float32),
            "w_qkv": w(lk[0], (d_model, 3 * d_model)),
            "b_qkv": jnp.zeros((3 * d_model,), jnp.float32),
            "wo": w(lk[1], (d_model, d_model)),
            "bo": jnp.zeros((d_model,), jnp.float32),
            "ln2_g": jnp.ones((d_model,), jnp.float32),
            "ln2_b": jnp.zeros((d_model,), jnp.float32),
            "w_ff1": w(lk[2], (d_model, d_ff)),
            "b_ff1": jnp.zeros((d_ff,), jnp.float32),
            "w_ff2": w(lk[3], (d_ff, d_model)),
            "b_ff2": jnp.zeros((d_model,), jnp.float32),
        })
    return params


# ----------------------------------------------------------------------------
if __name__ == "__main__":
    key = jax.random.PRNGKey(0)
    B, n_mels, T = 2, 8, 16
    D, heads, d_ff, n_layers, eps = 32, 4, 64, 2, 1e-5

    k_x, k_p = jax.random.split(key)
    x = jax.random.normal(k_x, (B, n_mels, T), jnp.float32)

    S = T // 2  # conv2 stride-2 downsampling
    padding_mask = jnp.zeros((B, S), dtype=bool).at[1, S - 2:].set(True)
    # TODO(synk): MelExtractor / EncoderLayer source not provided; Whisper-style
    # conv frontend + pre-LN transformer assumed, dropout treated as identity.

    params = init_params(k_p, n_layers, n_mels, D, d_ff)
    fwd = jax.jit(functools.partial(encoder_forward, heads=heads, eps=eps))
    out = fwd(params, x, padding_mask)
    jax.block_until_ready(out)
    assert out.shape == (B, S, D), out.shape
    print("KERNEL_OK")
</pallas_src>

<mosaic_0001>
module attributes {stable_mosaic.version = 11 : i64} {
  func.func @_matmul_kernel(%arg0: i32, %arg1: i32, %arg2: memref<32x24xbf16, #tpu.memory_space<vmem>>, %arg3: memref<24x32xbf16, #tpu.memory_space<vmem>>, %arg4: memref<1x32xf32, #tpu.memory_space<vmem>>, %arg5: memref<32x32xbf16, #tpu.memory_space<vmem>>) attributes {dimension_semantics = [#tpu.dimension_semantics<parallel>, #tpu.dimension_semantics<parallel>], iteration_bounds = array<i64: 1, 1>, scalar_prefetch = 0 : i64, scratch_operands = 0 : i64, tpu.core_type = #tpu.core_type<tc>, window_params = [{transform_indices = @transform_0, window_bounds = array<i64: 32, 24>}, {transform_indices = @transform_1, window_bounds = array<i64: 24, 32>}, {transform_indices = @transform_2, window_bounds = array<i64: 1, 32>}, {transform_indices = @transform_3, window_bounds = array<i64: 32, 32>}]} {
    %c0 = arith.constant 0 : index
    %c0_0 = arith.constant 0 : index
    %0 = vector.load %arg2[%c0, %c0_0] : memref<32x24xbf16, #tpu.memory_space<vmem>>, vector<32x24xbf16>
    %c0_1 = arith.constant 0 : index
    %c0_2 = arith.constant 0 : index
    %1 = vector.load %arg3[%c0_1, %c0_2] : memref<24x32xbf16, #tpu.memory_space<vmem>>, vector<24x32xbf16>
    %cst = arith.constant dense<0.000000e+00> : vector<32x32xf32>
    %2 = tpu.matmul %0, %1, %cst {dimension_numbers = #tpu.dot_dimension_numbers<[1], [0], [0], [1], [0, 0, 1, 1], [], []>} : vector<32x24xbf16>, vector<24x32xbf16>, vector<32x32xf32> -> vector<32x32xf32>
    %c0_3 = arith.constant 0 : index
    %c0_4 = arith.constant 0 : index
    %3 = vector.load %arg4[%c0_3, %c0_4] : memref<1x32xf32, #tpu.memory_space<vmem>>, vector<1x32xf32>
    %4 = vector.broadcast %3 : vector<1x32xf32> to vector<32x32xf32>
    %5 = arith.addf %2, %4 : vector<32x32xf32>
    %6 = arith.mulf %5, %5 : vector<32x32xf32>
    %7 = arith.mulf %5, %6 : vector<32x32xf32>
    %cst_5 = arith.constant 4.471500e-02 : f32
    %8 = vector.broadcast %cst_5 : f32 to vector<32x32xf32>
    %9 = arith.mulf %8, %7 : vector<32x32xf32>
    %10 = arith.addf %5, %9 : vector<32x32xf32>
    %cst_6 = arith.constant 0.797884583 : f32
    %11 = vector.broadcast %cst_6 : f32 to vector<32x32xf32>
    %12 = arith.mulf %11, %10 : vector<32x32xf32>
    %13 = math.tanh %12 : vector<32x32xf32>
    %cst_7 = arith.constant 1.000000e+00 : f32
    %14 = vector.broadcast %cst_7 : f32 to vector<32x32xf32>
    %15 = arith.addf %14, %13 : vector<32x32xf32>
    %cst_8 = arith.constant 5.000000e-01 : f32
    %16 = vector.broadcast %cst_8 : f32 to vector<32x32xf32>
    %17 = arith.mulf %16, %15 : vector<32x32xf32>
    %18 = arith.mulf %5, %17 : vector<32x32xf32>
    %19 = arith.truncf %18 : vector<32x32xf32> to vector<32x32xbf16>
    %c0_9 = arith.constant 0 : index
    %c0_10 = arith.constant 0 : index
    %20 = vector.load %arg5[%c0_9, %c0_10] : memref<32x32xbf16, #tpu.memory_space<vmem>>, vector<32x32xbf16>
    tpu.vector_store %arg5[%c0_9, %c0_10], %19 {strides = array<i32>} : memref<32x32xbf16, #tpu.memory_space<vmem>>, vector<32x32xbf16>,
    return
  }
  func.func @transform_0(%arg0: i32, %arg1: i32) -> (i32, i32) {
    %c0_i32 = arith.constant 0 : i32
    %c0_i32_0 = arith.constant 0 : i32
    return %arg0, %c0_i32 : i32, i32
  }
  func.func @transform_1(%arg0: i32, %arg1: i32) -> (i32, i32) {
    %c0_i32 = arith.constant 0 : i32
    %c0_i32_0 = arith.constant 0 : i32
    return %c0_i32, %arg1 : i32, i32
  }
  func.func @transform_2(%arg0: i32, %arg1: i32) -> (i32, i32) {
    %c0_i32 = arith.constant 0 : i32
    %c0_i32_0 = arith.constant 0 : i32
    return %c0_i32, %arg1 : i32, i32
  }
  func.func @transform_3(%arg0: i32, %arg1: i32) -> (i32, i32) {
    %c0_i32 = arith.constant 0 : i32
    return %arg0, %arg1 : i32, i32
  }
}

module attributes {stable_mosaic.version = 11 : i64} {
  func.func @_matmul_kernel(%arg0: i32, %arg1: i32, %arg2: memref<16x96xbf16, #tpu.memory_space<vmem>>, %arg3: memref<96x32xbf16, #tpu.memory_space<vmem>>, %arg4: memref<1x32xf32, #tpu.memory_space<vmem>>, %arg5: memref<16x32xf32, #tpu.memory_space<vmem>>) attributes {dimension_semantics = [#tpu.dimension_semantics<parallel>, #tpu.dimension_semantics<parallel>], iteration_bounds = array<i64: 1, 1>, scalar_prefetch = 0 : i64, scratch_operands = 0 : i64, tpu.core_type = #tpu.core_type<tc>, window_params = [{transform_indices = @transform_0, window_bounds = array<i64: 16, 96>}, {transform_indices = @transform_1, window_bounds = array<i64: 96, 32>}, {transform_indices = @transform_2, window_bounds = array<i64: 1, 32>}, {transform_indices = @transform_3, window_bounds = array<i64: 16, 32>}]} {
    %c0 = arith.constant 0 : index
    %c0_0 = arith.constant 0 : index
    %0 = vector.load %arg2[%c0, %c0_0] : memref<16x96xbf16, #tpu.memory_space<vmem>>, vector<16x96xbf16>
    %c0_1 = arith.constant 0 : index
    %c0_2 = arith.constant 0 : index
    %1 = vector.load %arg3[%c0_1, %c0_2] : memref<96x32xbf16, #tpu.memory_space<vmem>>, vector<96x32xbf16>
    %cst = arith.constant dense<0.000000e+00> : vector<16x32xf32>
    %2 = tpu.matmul %0, %1, %cst {dimension_numbers = #tpu.dot_dimension_numbers<[1], [0], [0], [1], [0, 0, 1, 1], [], []>} : vector<16x96xbf16>, vector<96x32xbf16>, vector<16x32xf32> -> vector<16x32xf32>
    %c0_3 = arith.constant 0 : index
    %c0_4 = arith.constant 0 : index
    %3 = vector.load %arg4[%c0_3, %c0_4] : memref<1x32xf32, #tpu.memory_space<vmem>>, vector<1x32xf32>
    %4 = vector.broadcast %3 : vector<1x32xf32> to vector<16x32xf32>
    %5 = arith.addf %2, %4 : vector<16x32xf32>
    %6 = arith.mulf %5, %5 : vector<16x32xf32>
    %7 = arith.mulf %5, %6 : vector<16x32xf32>
    %cst_5 = arith.constant 4.471500e-02 : f32
    %8 = vector.broadcast %cst_5 : f32 to vector<16x32xf32>
    %9 = arith.mulf %8, %7 : vector<16x32xf32>
    %10 = arith.addf %5, %9 : vector<16x32xf32>
    %cst_6 = arith.constant 0.797884583 : f32
    %11 = vector.broadcast %cst_6 : f32 to vector<16x32xf32>
    %12 = arith.mulf %11, %10 : vector<16x32xf32>
    %13 = math.tanh %12 : vector<16x32xf32>
    %cst_7 = arith.constant 1.000000e+00 : f32
    %14 = vector.broadcast %cst_7 : f32 to vector<16x32xf32>
    %15 = arith.addf %14, %13 : vector<16x32xf32>
    %cst_8 = arith.constant 5.000000e-01 : f32
    %16 = vector.broadcast %cst_8 : f32 to vector<16x32xf32>
    %17 = arith.mulf %16, %15 : vector<16x32xf32>
    %18 = arith.mulf %5, %17 : vector<16x32xf32>
    %c0_9 = arith.constant 0 : index
    %c0_10 = arith.constant 0 : index
    %19 = vector.load %arg5[%c0_9, %c0_10] : memref<16x32xf32, #tpu.memory_space<vmem>>, vector<16x32xf32>
    tpu.vector_store %arg5[%c0_9, %c0_10], %18 {strides = array<i32>} : memref<16x32xf32, #tpu.memory_space<vmem>>, vector<16x32xf32>,
    return
  }
  func.func @transform_0(%arg0: i32, %arg1: i32) -> (i32, i32) {
    %c0_i32 = arith.constant 0 : i32
    %c0_i32_0 = arith.constant 0 : i32
    return %arg0, %c0_i32 : i32, i32
  }
  func.func @transform_1(%arg0: i32, %arg1: i32) -> (i32, i32) {
    %c0_i32 = arith.constant 0 : i32
    %c0_i32_0 = arith.constant 0 : i32
    return %c0_i32, %arg1 : i32, i32
  }
  func.func @transform_2(%arg0: i32, %arg1: i32) -> (i32, i32) {
    %c0_i32 = arith.constant 0 : i32
    %c0_i32_0 = arith.constant 0 : i32
    return %c0_i32, %arg1 : i32, i32
  }
  func.func @transform_3(%arg0: i32, %arg1: i32) -> (i32, i32) {
    %c0_i32 = arith.constant 0 : i32
    return %arg0, %arg1 : i32, i32
  }
}

module attributes {stable_mosaic.version = 11 : i64} {
  func.func @_matmul_kernel(%arg0: i32, %arg1: i32, %arg2: memref<16x32xf32, #tpu.memory_space<vmem>>, %arg3: memref<1x32xf32, #tpu.memory_space<vmem>>, %arg4: memref<1x32xf32, #tpu.memory_space<vmem>>, %arg5: memref<32x96xbf16, #tpu.memory_space<vmem>>, %arg6: memref<1x96xf32, #tpu.memory_space<vmem>>, %arg7: memref<16x96xbf16, #tpu.memory_space<vmem>>) attributes {dimension_semantics = [#tpu.dimension_semantics<parallel>, #tpu.dimension_semantics<parallel>], iteration_bounds = array<i64: 1, 1>, scalar_prefetch = 0 : i64, scratch_operands = 0 : i64, tpu.core_type = #tpu.core_type<tc>, window_params = [{transform_indices = @transform_0, window_bounds = array<i64: 16, 32>}, {pipeline_mode = #tpu.pipeline_mode<synchronous>, transform_indices = @transform_1, window_bounds = array<i64: 1, 32>}, {pipeline_mode = #tpu.pipeline_mode<synchronous>, transform_indices = @transform_2, window_bounds = array<i64: 1, 32>}, {transform_indices = @transform_3, window_bounds = array<i64: 32, 96>}, {transform_indices = @transform_4, window_bounds = array<i64: 1, 96>}, {transform_indices = @transform_5, window_bounds = array<i64: 16, 96>}]} {
    %c0 = arith.constant 0 : index
    %c0_0 = arith.constant 0 : index
    %0 = vector.load %arg2[%c0, %c0_0] : memref<16x32xf32, #tpu.memory_space<vmem>>, vector<16x32xf32>
    %cst = arith.constant dense<0.000000e+00> : vector<16xf32>
    %1 = vector.multi_reduction <add>, %0, %cst [1] : vector<16x32xf32> to vector<16xf32>
    %2 = vector.shape_cast %1 : vector<16xf32> to vector<16x1xf32>
    %cst_1 = arith.constant 3.200000e+01 : f32
    %3 = vector.broadcast %cst_1 : f32 to vector<16x1xf32>
    %4 = arith.divf %2, %3 : vector<16x1xf32>
    %5 = vector.broadcast %4 : vector<16x1xf32> to vector<16x32xf32>
    %6 = arith.subf %0, %5 : vector<16x32xf32>
    %7 = arith.mulf %6, %6 : vector<16x32xf32>
    %cst_2 = arith.constant dense<0.000000e+00> : vector<16xf32>
    %8 = vector.multi_reduction <add>, %7, %cst_2 [1] : vector<16x32xf32> to vector<16xf32>
    %9 = vector.shape_cast %8 : vector<16xf32> to vector<16x1xf32>
    %cst_3 = arith.constant 3.200000e+01 : f32
    %10 = vector.broadcast %cst_3 : f32 to vector<16x1xf32>
    %11 = arith.divf %9, %10 : vector<16x1xf32>
    %12 = vector.broadcast %4 : vector<16x1xf32> to vector<16x32xf32>
    %13 = arith.subf %0, %12 : vector<16x32xf32>
    %cst_4 = arith.constant 9.99999974E-6 : f32
    %14 = vector.broadcast %cst_4 : f32 to vector<16x1xf32>
    %15 = arith.addf %11, %14 : vector<16x1xf32>
    %16 = math.rsqrt %15 : vector<16x1xf32>
    %17 = vector.broadcast %16 : vector<16x1xf32> to vector<16x32xf32>
    %18 = arith.mulf %13, %17 : vector<16x32xf32>
    %c0_5 = arith.constant 0 : index
    %c0_6 = arith.constant 0 : index
    %19 = vector.load %arg3[%c0_5, %c0_6] : memref<1x32xf32, #tpu.memory_space<vmem>>, vector<1x32xf32>
    %20 = vector.broadcast %19 : vector<1x32xf32> to vector<16x32xf32>
    %21 = arith.mulf %18, %20 : vector<16x32xf32>
    %c0_7 = arith.constant 0 : index
    %c0_8 = arith.constant 0 : index
    %22 = vector.load %arg4[%c0_7, %c0_8] : memref<1x32xf32, #tpu.memory_space<vmem>>, vector<1x32xf32>
    %23 = vector.broadcast %22 : vector<1x32xf32> to vector<16x32xf32>
    %24 = arith.addf %21, %23 : vector<16x32xf32>
    %25 = arith.truncf %24 : vector<16x32xf32> to vector<16x32xbf16>
    %c0_9 = arith.constant 0 : index
    %c0_10 = arith.constant 0 : index
    %26 = vector.load %arg5[%c0_9, %c0_10] : memref<32x96xbf16, #tpu.memory_space<vmem>>, vector<32x96xbf16>
    %cst_11 = arith.constant dense<0.000000e+00> : vector<16x96xf32>
    %27 = tpu.matmul %25, %26, %cst_11 {dimension_numbers = #tpu.dot_dimension_numbers<[1], [0], [0], [1], [0, 0, 1, 1], [], []>} : vector<16x32xbf16>, vector<32x96xbf16>, vector<16x96xf32> -> vector<16x96xf32>
    %c0_12 = arith.constant 0 : index
    %c0_13 = arith.constant 0 : index
    %28 = vector.load %arg6[%c0_12, %c0_13] : memref<1x96xf32, #tpu.memory_space<vmem>>, vector<1x96xf32>
    %29 = vector.broadcast %28 : vector<1x96xf32> to vector<16x96xf32>
    %30 = arith.addf %27, %29 : vector<16x96xf32>
    %31 = arith.truncf %30 : vector<16x96xf32> to vector<16x96xbf16>
    %c0_14 = arith.constant 0 : index
    %c0_15 = arith.constant 0 : index
    %32 = vector.load %arg7[%c0_14, %c0_15] : memref<16x96xbf16, #tpu.memory_space<vmem>>, vector<16x96xbf16>
    tpu.vector_store %arg7[%c0_14, %c0_15], %31 {strides = array<i32>} : memref<16x96xbf16, #tpu.memory_space<vmem>>, vector<16x96xbf16>,
    return
  }
  func.func @transform_0(%arg0: i32, %arg1: i32) -> (i32, i32) {
    %c0_i32 = arith.constant 0 : i32
    %c0_i32_0 = arith.constant 0 : i32
    return %arg0, %c0_i32 : i32, i32
  }
  func.func @transform_1(%arg0: i32, %arg1: i32) -> (i32, i32) {
    %c0_i32 = arith.constant 0 : i32
    %c0_i32_0 = arith.constant 0 : i32
    %c0_i32_1 = arith.constant 0 : i32
    return %c0_i32, %c0_i32_0 : i32, i32
  }
  func.func @transform_2(%arg0: i32, %arg1: i32) -> (i32, i32) {
    %c0_i32 = arith.constant 0 : i32
    %c0_i32_0 = arith.constant 0 : i32
    %c0_i32_1 = arith.constant 0 : i32
    return %c0_i32, %c0_i32_0 : i32, i32
  }
  func.func @transform_3(%arg0: i32, %arg1: i32) -> (i32, i32) {
    %c0_i32 = arith.constant 0 : i32
    %c0_i32_0 = arith.constant 0 : i32
    return %c0_i32, %arg1 : i32, i32
  }
  func.func @transform_4(%arg0: i32, %arg1: i32) -> (i32, i32) {
    %c0_i32 = arith.constant 0 : i32
    %c0_i32_0 = arith.constant 0 : i32
    return %c0_i32, %arg1 : i32, i32
  }
  func.func @transform_5(%arg0: i32, %arg1: i32) -> (i32, i32) {
    %c0_i32 = arith.constant 0 : i32
    return %arg0, %arg1 : i32, i32
  }
}

module attributes {stable_mosaic.version = 11 : i64} {
  func.func @_flash_attn_kernel(%arg0: i32, %arg1: i32, %arg2: i32, %arg3: memref<1x4x8x8xbf16, #tpu.memory_space<vmem>>, %arg4: memref<1x4x8x8xbf16, #tpu.memory_space<vmem>>, %arg5: memref<1x4x8x8xbf16, #tpu.memory_space<vmem>>, %arg6: memref<1x1x8xf32, #tpu.memory_space<vmem>>, %arg7: memref<1x4x8x8xbf16, #tpu.memory_space<vmem>>, %arg8: memref<4x8x128xf32, #tpu.memory_space<vmem>>, %arg9: memref<4x8x128xf32, #tpu.memory_space<vmem>>, %arg10: memref<4x8x8xf32, #tpu.memory_space<vmem>>) attributes {dimension_semantics = [#tpu.dimension_semantics<parallel>, #tpu.dimension_semantics<parallel>, #tpu.dimension_semantics<arbitrary>], iteration_bounds = array<i64: 2, 1, 1>, scalar_prefetch = 0 : i64, scratch_operands = 3 : i64, tpu.core_type = #tpu.core_type<tc>, window_params = [{transform_indices = @transform_0, window_bounds = array<i64: 1, 4, 8, 8>}, {transform_indices = @transform_1, window_bounds = array<i64: 1, 4, 8, 8>}, {transform_indices = @transform_2, window_bounds = array<i64: 1, 4, 8, 8>}, {transform_indices = @transform_3, window_bounds = array<i64: 1, 1, 8>}, {transform_indices = @transform_4, window_bounds = array<i64: 1, 4, 8, 8>}]} {
    %c0_i32 = arith.constant 0 : i32
    %0 = arith.cmpi eq, %arg2, %c0_i32 : i32
    %1 = arith.extui %0 : i1 to i32
    %c0_i32_0 = arith.constant 0 : i32
    %2 = arith.cmpi ne, %1, %c0_i32_0 : i32
    scf.if %2 {
      %cst_39 = arith.constant 0xFF800000 : f32
      %45 = vector.broadcast %cst_39 : f32 to vector<4x8x128xf32>
      %c0_40 = arith.constant 0 : index
      %c0_41 = arith.constant 0 : index
      %c0_42 = arith.constant 0 : index
      %46 = vector.load %arg8[%c0_40, %c0_41, %c0_42] : memref<4x8x128xf32, #tpu.memory_space<vmem>>, vector<4x8x128xf32>
      tpu.vector_store %arg8[%c0_40, %c0_41, %c0_42], %45 {strides = array<i32>} : memref<4x8x128xf32, #tpu.memory_space<vmem>>, vector<4x8x128xf32>,
      %cst_43 = arith.constant 0.000000e+00 : f32
      %47 = vector.broadcast %cst_43 : f32 to vector<4x8x128xf32>
      %c0_44 = arith.constant 0 : index
      %c0_45 = arith.constant 0 : index
      %c0_46 = arith.constant 0 : index
      %48 = vector.load %arg9[%c0_44, %c0_45, %c0_46] : memref<4x8x128xf32, #tpu.memory_space<vmem>>, vector<4x8x128xf32>
      tpu.vector_store %arg9[%c0_44, %c0_45, %c0_46], %47 {strides = array<i32>} : memref<4x8x128xf32, #tpu.memory_space<vmem>>, vector<4x8x128xf32>,
      %cst_47 = arith.constant 0.000000e+00 : f32
      %49 = vector.broadcast %cst_47 : f32 to vector<4x8x8xf32>
      %c0_48 = arith.constant 0 : index
      %c0_49 = arith.constant 0 : index
      %c0_50 = arith.constant 0 : index
      %50 = vector.load %arg10[%c0_48, %c0_49, %c0_50] : memref<4x8x8xf32, #tpu.memory_space<vmem>>, vector<4x8x8xf32>
      tpu.vector_store %arg10[%c0_48, %c0_49, %c0_50], %49 {strides = array<i32>} : memref<4x8x8xf32, #tpu.memory_space<vmem>>, vector<4x8x8xf32>,
    } else {
    }
    %c0 = arith.constant 0 : index
    %c0_1 = arith.constant 0 : index
    %c0_2 = arith.constant 0 : index
    %c0_3 = arith.constant 0 : index
    %3 = vector.load %arg3[%c0, %c0_1, %c0_2, %c0_3] : memref<1x4x8x8xbf16, #tpu.memory_space<vmem>>, vector<1x4x8x8xbf16>
    %4 = vector.shape_cast %3 : vector<1x4x8x8xbf16> to vector<4x8x8xbf16>
    %c0_4 = arith.constant 0 : index
    %c0_5 = arith.constant 0 : index
    %c0_6 = arith.constant 0 : index
    %c0_7 = arith.constant 0 : index
    %5 = vector.load %arg4[%c0_4, %c0_5, %c0_6, %c0_7] : memref<1x4x8x8xbf16, #tpu.memory_space<vmem>>, vector<1x4x8x8xbf16>
    %6 = vector.shape_cast %5 : vector<1x4x8x8xbf16> to vector<4x8x8xbf16>
    "tpu.trace_start"() <{level = 10 : i32, message = "hqd,hkd->hqk"}> : () -> ()
    %cst = arith.constant dense<0.000000e+00> : vector<4x8x8xf32>
    %7 = tpu.matmul %4, %6, %cst {dimension_numbers = #tpu.dot_dimension_numbers<[2], [2], [1], [1], [0, 0, 0, 1, 1, 1], [0], [0]>} : vector<4x8x8xbf16>, vector<4x8x8xbf16>, vector<4x8x8xf32> -> vector<4x8x8xf32>
    "tpu.trace_stop"() : () -> ()
    %cst_8 = arith.constant 0.353553385 : f32
    %8 = vector.broadcast %cst_8 : f32 to vector<4x8x8xf32>
    %9 = arith.mulf %7, %8 : vector<4x8x8xf32>
    %c0_9 = arith.constant 0 : index
    %c0_10 = arith.constant 0 : index
    %c0_11 = arith.constant 0 : index
    %10 = vector.load %arg6[%c0_9, %c0_10, %c0_11] : memref<1x1x8xf32, #tpu.memory_space<vmem>>, vector<1x1x8xf32>
    %11 = vector.broadcast %10 : vector<1x1x8xf32> to vector<4x8x8xf32>
    %12 = arith.addf %9, %11 : vector<4x8x8xf32>
    %c0_12 = arith.constant 0 : index
    %c0_13 = arith.constant 0 : index
    %c0_14 = arith.constant 0 : index
    %13 = vector.load %arg8[%c0_12, %c0_13, %c0_14] : memref<4x8x128xf32, #tpu.memory_space<vmem>>, vector<4x8x128xf32>
    %cst_15 = arith.constant dense<0xFF800000> : vector<4x8xf32>
    %14 = vector.multi_reduction <maximumf>, %12, %cst_15 [2] : vector<4x8x8xf32> to vector<4x8xf32>
    %15 = vector.shape_cast %14 : vector<4x8xf32> to vector<4x8x1xf32>
    %16 = vector.broadcast %15 : vector<4x8x1xf32> to vector<4x8x128xf32>
    %17 = arith.maximumf %13, %16 : vector<4x8x128xf32>
    %18 = arith.subf %13, %17 : vector<4x8x128xf32>
    %19 = math.exp %18 : vector<4x8x128xf32>
    %20 = vector.extract_strided_slice %17 {offsets = [0, 0, 0], sizes = [4, 8, 1], strides = [1, 1, 1]} : vector<4x8x128xf32> to vector<4x8x1xf32>
    %21 = vector.broadcast %20 : vector<4x8x1xf32> to vector<4x8x8xf32>
    %22 = arith.subf %12, %21 : vector<4x8x8xf32>
    %23 = math.exp %22 : vector<4x8x8xf32>
    %c0_16 = arith.constant 0 : index
    %c0_17 = arith.constant 0 : index
    %c0_18 = arith.constant 0 : index
    %24 = vector.load %arg9[%c0_16, %c0_17, %c0_18] : memref<4x8x128xf32, #tpu.memory_space<vmem>>, vector<4x8x128xf32>
    %25 = arith.mulf %19, %24 : vector<4x8x128xf32>
    %cst_19 = arith.constant dense<0.000000e+00> : vector<4x8xf32>
    %26 = vector.multi_reduction <add>, %23, %cst_19 [2] : vector<4x8x8xf32> to vector<4x8xf32>
    %27 = vector.shape_cast %26 : vector<4x8xf32> to vector<4x8x1xf32>
    %28 = vector.broadcast %27 : vector<4x8x1xf32> to vector<4x8x128xf32>
    %29 = arith.addf %25, %28 : vector<4x8x128xf32>
    %c0_20 = arith.constant 0 : index
    %c0_21 = arith.constant 0 : index
    %c0_22 = arith.constant 0 : index
    %30 = vector.load %arg9[%c0_20, %c0_21, %c0_22] : memref<4x8x128xf32, #tpu.memory_space<vmem>>, vector<4x8x128xf32>
    tpu.vector_store %arg9[%c0_20, %c0_21, %c0_22], %29 {strides = array<i32>} : memref<4x8x128xf32, #tpu.memory_space<vmem>>, vector<4x8x128xf32>,
    %31 = vector.extract_strided_slice %19 {offsets = [0, 0, 0], sizes = [4, 8, 1], strides = [1, 1, 1]} : vector<4x8x128xf32> to vector<4x8x1xf32>
    %c0_23 = arith.constant 0 : index
    %c0_24 = arith.constant 0 : index
    %c0_25 = arith.constant 0 : index
    %32 = vector.load %arg10[%c0_23, %c0_24, %c0_25] : memref<4x8x8xf32, #tpu.memory_space<vmem>>, vector<4x8x8xf32>
    %33 = vector.broadcast %31 : vector<4x8x1xf32> to vector<4x8x8xf32>
    %34 = arith.mulf %33, %32 : vector<4x8x8xf32>
    %35 = arith.truncf %23 : vector<4x8x8xf32> to vector<4x8x8xbf16>
    %c0_26 = arith.constant 0 : index
    %c0_27 = arith.constant 0 : index
    %c0_28 = arith.constant 0 : index
    %c0_29 = arith.constant 0 : index
    %36 = vector.load %arg5[%c0_26, %c0_27, %c0_28, %c0_29] : memref<1x4x8x8xbf16, #tpu.memory_space<vmem>>, vector<1x4x8x8xbf16>
    %37 = vector.shape_cast %36 : vector<1x4x8x8xbf16> to vector<4x8x8xbf16>
    "tpu.trace_start"() <{level = 10 : i32, message = "hqk,hkd->hqd"}> : () -> ()
    %cst_30 = arith.constant dense<0.000000e+00> : vector<4x8x8xf32>
    %38 = tpu.matmul %35, %37, %cst_30 {dimension_numbers = #tpu.dot_dimension_numbers<[2], [1], [1], [2], [0, 0, 0, 1, 1, 2], [0], [0]>} : vector<4x8x8xbf16>, vector<4x8x8xbf16>, vector<4x8x8xf32> -> vector<4x8x8xf32>
    "tpu.trace_stop"() : () -> ()
    %39 = arith.addf %34, %38 : vector<4x8x8xf32>
    %c0_31 = arith.constant 0 : index
    %c0_32 = arith.constant 0 : index
    %c0_33 = arith.constant 0 : index
    %40 = vector.load %arg10[%c0_31, %c0_32, %c0_33] : memref<4x8x8xf32, #tpu.memory_space<vmem>>, vector<4x8x8xf32>
    tpu.vector_store %arg10[%c0_31, %c0_32, %c0_33], %39 {strides = array<i32>} : memref<4x8x8xf32, #tpu.memory_space<vmem>>, vector<4x8x8xf32>,
    %c0_34 = arith.constant 0 : index
    %c0_35 = arith.constant 0 : index
    %c0_36 = arith.constant 0 : index
    %41 = vector.load %arg8[%c0_34, %c0_35, %c0_36] : memref<4x8x128xf32, #tpu.memory_space<vmem>>, vector<4x8x128xf32>
    tpu.vector_store %arg8[%c0_34, %c0_35, %c0_36], %17 {strides = array<i32>} : memref<4x8x128xf32, #tpu.memory_space<vmem>>, vector<4x8x128xf32>,
    %c0_i32_37 = arith.constant 0 : i32
    %42 = arith.cmpi eq, %arg2, %c0_i32_37 : i32
    %43 = arith.extui %42 : i1 to i32
    %c0_i32_38 = arith.constant 0 : i32
    %44 = arith.cmpi ne, %43, %c0_i32_38 : i32
    scf.if %44 {
      %c0_39 = arith.constant 0 : index
      %c0_40 = arith.constant 0 : index
      %c0_41 = arith.constant 0 : index
      %45 = vector.load %arg9[%c0_39, %c0_40, %c0_41] : memref<4x8x128xf32, #tpu.memory_space<vmem>>, vector<4x8x128xf32>
      %46 = tpu.reciprocal %45 {approx = true} : vector<4x8x128xf32> -> vector<4x8x128xf32>
      %c0_42 = arith.constant 0 : index
      %c0_43 = arith.constant 0 : index
      %c0_44 = arith.constant 0 : index
      %47 = vector.load %arg10[%c0_42, %c0_43, %c0_44] : memref<4x8x8xf32, #tpu.memory_space<vmem>>, vector<4x8x8xf32>
      %48 = vector.extract_strided_slice %46 {offsets = [0, 0, 0], sizes = [4, 8, 1], strides = [1, 1, 1]} : vector<4x8x128xf32> to vector<4x8x1xf32>
      %49 = vector.broadcast %48 : vector<4x8x1xf32> to vector<4x8x8xf32>
      %50 = arith.mulf %47, %49 : vector<4x8x8xf32>
      %51 = arith.truncf %50 : vector<4x8x8xf32> to vector<4x8x8xbf16>
      %c0_45 = arith.constant 0 : index
      %c0_46 = arith.constant 0 : index
      %c0_47 = arith.constant 0 : index
      %c0_48 = arith.constant 0 : index
      %52 = vector.load %arg7[%c0_45, %c0_46, %c0_47, %c0_48] : memref<1x4x8x8xbf16, #tpu.memory_space<vmem>>, vector<1x4x8x8xbf16>
      %53 = vector.shape_cast %52 : vector<1x4x8x8xbf16> to vector<4x8x8xbf16>
      %54 = vector.shape_cast %51 : vector<4x8x8xbf16> to vector<1x4x8x8xbf16>
      tpu.vector_store %arg7[%c0_45, %c0_46, %c0_47, %c0_48], %54 {strides = array<i32>} : memref<1x4x8x8xbf16, #tpu.memory_space<vmem>>, vector<1x4x8x8xbf16>,
    } else {
    }
    return
  }
  func.func @transform_0(%arg0: i32, %arg1: i32, %arg2: i32) -> (i32, i32, i32, i32) {
    %c0_i32 = arith.constant 0 : i32
    %c0_i32_0 = arith.constant 0 : i32
    %c0_i32_1 = arith.constant 0 : i32
    return %arg0, %c0_i32, %arg1, %c0_i32_0 : i32, i32, i32, i32
  }
  func.func @transform_1(%arg0: i32, %arg1: i32, %arg2: i32) -> (i32, i32, i32, i32) {
    %c0_i32 = arith.constant 0 : i32
    %c0_i32_0 = arith.constant 0 : i32
    %c0_i32_1 = arith.constant 0 : i32
    return %arg0, %c0_i32, %arg2, %c0_i32_0 : i32, i32, i32, i32
  }
  func.func @transform_2(%arg0: i32, %arg1: i32, %arg2: i32) -> (i32, i32, i32, i32) {
    %c0_i32 = arith.constant 0 : i32
    %c0_i32_0 = arith.constant 0 : i32
    %c0_i32_1 = arith.constant 0 : i32
    return %arg0, %c0_i32, %arg2, %c0_i32_0 : i32, i32, i32, i32
  }
  func.func @transform_3(%arg0: i32, %arg1: i32, %arg2: i32) -> (i32, i32, i32) {
    %c0_i32 = arith.constant 0 : i32
    %c0_i32_0 = arith.constant 0 : i32
    return %arg0, %c0_i32, %arg2 : i32, i32, i32
  }
  func.func @transform_4(%arg0: i32, %arg1: i32, %arg2: i32) -> (i32, i32, i32, i32) {
    %c0_i32 = arith.constant 0 : i32
    %c0_i32_0 = arith.constant 0 : i32
    %c0_i32_1 = arith.constant 0 : i32
    return %arg0, %c0_i32, %arg1, %c0_i32_0 : i32, i32, i32, i32
  }
}

module attributes {stable_mosaic.version = 11 : i64} {
  func.func @_matmul_kernel(%arg0: i32, %arg1: i32, %arg2: memref<16x32xbf16, #tpu.memory_space<vmem>>, %arg3: memref<32x32xbf16, #tpu.memory_space<vmem>>, %arg4: memref<1x32xf32, #tpu.memory_space<vmem>>, %arg5: memref<16x32xf32, #tpu.memory_space<vmem>>, %arg6: memref<16x32xf32, #tpu.memory_space<vmem>>) attributes {dimension_semantics = [#tpu.dimension_semantics<parallel>, #tpu.dimension_semantics<parallel>], iteration_bounds = array<i64: 1, 1>, scalar_prefetch = 0 : i64, scratch_operands = 0 : i64, tpu.core_type = #tpu.core_type<tc>, window_params = [{transform_indices = @transform_0, window_bounds = array<i64: 16, 32>}, {transform_indices = @transform_1, window_bounds = array<i64: 32, 32>}, {transform_indices = @transform_2, window_bounds = array<i64: 1, 32>}, {transform_indices = @transform_3, window_bounds = array<i64: 16, 32>}, {transform_indices = @transform_4, window_bounds = array<i64: 16, 32>}]} {
    %c0 = arith.constant 0 : index
    %c0_0 = arith.constant 0 : index
    %0 = vector.load %arg2[%c0, %c0_0] : memref<16x32xbf16, #tpu.memory_space<vmem>>, vector<16x32xbf16>
    %c0_1 = arith.constant 0 : index
    %c0_2 = arith.constant 0 : index
    %1 = vector.load %arg3[%c0_1, %c0_2] : memref<32x32xbf16, #tpu.memory_space<vmem>>, vector<32x32xbf16>
    %cst = arith.constant dense<0.000000e+00> : vector<16x32xf32>
    %2 = tpu.matmul %0, %1, %cst {dimension_numbers = #tpu.dot_dimension_numbers<[1], [0], [0], [1], [0, 0, 1, 1], [], []>} : vector<16x32xbf16>, vector<32x32xbf16>, vector<16x32xf32> -> vector<16x32xf32>
    %c0_3 = arith.constant 0 : index
    %c0_4 = arith.constant 0 : index
    %3 = vector.load %arg4[%c0_3, %c0_4] : memref<1x32xf32, #tpu.memory_space<vmem>>, vector<1x32xf32>
    %4 = vector.broadcast %3 : vector<1x32xf32> to vector<16x32xf32>
    %5 = arith.addf %2, %4 : vector<16x32xf32>
    %c0_5 = arith.constant 0 : index
    %c0_6 = arith.constant 0 : index
    %6 = vector.load %arg5[%c0_5, %c0_6] : memref<16x32xf32, #tpu.memory_space<vmem>>, vector<16x32xf32>
    %7 = arith.addf %5, %6 : vector<16x32xf32>
    %c0_7 = arith.constant 0 : index
    %c0_8 = arith.constant 0 : index
    %8 = vector.load %arg6[%c0_7, %c0_8] : memref<16x32xf32, #tpu.memory_space<vmem>>, vector<16x32xf32>
    tpu.vector_store %arg6[%c0_7, %c0_8], %7 {strides = array<i32>} : memref<16x32xf32, #tpu.memory_space<vmem>>, vector<16x32xf32>,
    return
  }
  func.func @transform_0(%arg0: i32, %arg1: i32) -> (i32, i32) {
    %c0_i32 = arith.constant 0 : i32
    %c0_i32_0 = arith.constant 0 : i32
    return %arg0, %c0_i32 : i32, i32
  }
  func.func @transform_1(%arg0: i32, %arg1: i32) -> (i32, i32) {
    %c0_i32 = arith.constant 0 : i32
    %c0_i32_0 = arith.constant 0 : i32
    return %c0_i32, %arg1 : i32, i32
  }
  func.func @transform_2(%arg0: i32, %arg1: i32) -> (i32, i32) {
    %c0_i32 = arith.constant 0 : i32
    %c0_i32_0 = arith.constant 0 : i32
    return %c0_i32, %arg1 : i32, i32
  }
  func.func @transform_3(%arg0: i32, %arg1: i32) -> (i32, i32) {
    %c0_i32 = arith.constant 0 : i32
    return %arg0, %arg1 : i32, i32
  }
  func.func @transform_4(%arg0: i32, %arg1: i32) -> (i32, i32) {
    %c0_i32 = arith.constant 0 : i32
    return %arg0, %arg1 : i32, i32
  }
}

module attributes {stable_mosaic.version = 11 : i64} {
  func.func @_matmul_kernel(%arg0: i32, %arg1: i32, %arg2: memref<16x32xf32, #tpu.memory_space<vmem>>, %arg3: memref<1x32xf32, #tpu.memory_space<vmem>>, %arg4: memref<1x32xf32, #tpu.memory_space<vmem>>, %arg5: memref<32x64xbf16, #tpu.memory_space<vmem>>, %arg6: memref<1x64xf32, #tpu.memory_space<vmem>>, %arg7: memref<16x64xbf16, #tpu.memory_space<vmem>>) attributes {dimension_semantics = [#tpu.dimension_semantics<parallel>, #tpu.dimension_semantics<parallel>], iteration_bounds = array<i64: 1, 1>, scalar_prefetch = 0 : i64, scratch_operands = 0 : i64, tpu.core_type = #tpu.core_type<tc>, window_params = [{transform_indices = @transform_0, window_bounds = array<i64: 16, 32>}, {pipeline_mode = #tpu.pipeline_mode<synchronous>, transform_indices = @transform_1, window_bounds = array<i64: 1, 32>}, {pipeline_mode = #tpu.pipeline_mode<synchronous>, transform_indices = @transform_2, window_bounds = array<i64: 1, 32>}, {transform_indices = @transform_3, window_bounds = array<i64: 32, 64>}, {transform_indices = @transform_4, window_bounds = array<i64: 1, 64>}, {transform_indices = @transform_5, window_bounds = array<i64: 16, 64>}]} {
    %c0 = arith.constant 0 : index
    %c0_0 = arith.constant 0 : index
    %0 = vector.load %arg2[%c0, %c0_0] : memref<16x32xf32, #tpu.memory_space<vmem>>, vector<16x32xf32>
    %cst = arith.constant dense<0.000000e+00> : vector<16xf32>
    %1 = vector.multi_reduction <add>, %0, %cst [1] : vector<16x32xf32> to vector<16xf32>
    %2 = vector.shape_cast %1 : vector<16xf32> to vector<16x1xf32>
    %cst_1 = arith.constant 3.200000e+01 : f32
    %3 = vector.broadcast %cst_1 : f32 to vector<16x1xf32>
    %4 = arith.divf %2, %3 : vector<16x1xf32>
    %5 = vector.broadcast %4 : vector<16x1xf32> to vector<16x32xf32>
    %6 = arith.subf %0, %5 : vector<16x32xf32>
    %7 = arith.mulf %6, %6 : vector<16x32xf32>
    %cst_2 = arith.constant dense<0.000000e+00> : vector<16xf32>
    %8 = vector.multi_reduction <add>, %7, %cst_2 [1] : vector<16x32xf32> to vector<16xf32>
    %9 = vector.shape_cast %8 : vector<16xf32> to vector<16x1xf32>
    %cst_3 = arith.constant 3.200000e+01 : f32
    %10 = vector.broadcast %cst_3 : f32 to vector<16x1xf32>
    %11 = arith.divf %9, %10 : vector<16x1xf32>
    %12 = vector.broadcast %4 : vector<16x1xf32> to vector<16x32xf32>
    %13 = arith.subf %0, %12 : vector<16x32xf32>
    %cst_4 = arith.constant 9.99999974E-6 : f32
    %14 = vector.broadcast %cst_4 : f32 to vector<16x1xf32>
    %15 = arith.addf %11, %14 : vector<16x1xf32>
    %16 = math.rsqrt %15 : vector<16x1xf32>
    %17 = vector.broadcast %16 : vector<16x1xf32> to vector<16x32xf32>
    %18 = arith.mulf %13, %17 : vector<16x32xf32>
    %c0_5 = arith.constant 0 : index
    %c0_6 = arith.constant 0 : index
    %19 = vector.load %arg3[%c0_5, %c0_6] : memref<1x32xf32, #tpu.memory_space<vmem>>, vector<1x32xf32>
    %20 = vector.broadcast %19 : vector<1x32xf32> to vector<16x32xf32>
    %21 = arith.mulf %18, %20 : vector<16x32xf32>
    %c0_7 = arith.constant 0 : index
    %c0_8 = arith.constant 0 : index
    %22 = vector.load %arg4[%c0_7, %c0_8] : memref<1x32xf32, #tpu.memory_space<vmem>>, vector<1x32xf32>
    %23 = vector.broadcast %22 : vector<1x32xf32> to vector<16x32xf32>
    %24 = arith.addf %21, %23 : vector<16x32xf32>
    %25 = arith.truncf %24 : vector<16x32xf32> to vector<16x32xbf16>
    %c0_9 = arith.constant 0 : index
    %c0_10 = arith.constant 0 : index
    %26 = vector.load %arg5[%c0_9, %c0_10] : memref<32x64xbf16, #tpu.memory_space<vmem>>, vector<32x64xbf16>
    %cst_11 = arith.constant dense<0.000000e+00> : vector<16x64xf32>
    %27 = tpu.matmul %25, %26, %cst_11 {dimension_numbers = #tpu.dot_dimension_numbers<[1], [0], [0], [1], [0, 0, 1, 1], [], []>} : vector<16x32xbf16>, vector<32x64xbf16>, vector<16x64xf32> -> vector<16x64xf32>
    %c0_12 = arith.constant 0 : index
    %c0_13 = arith.constant 0 : index
    %28 = vector.load %arg6[%c0_12, %c0_13] : memref<1x64xf32, #tpu.memory_space<vmem>>, vector<1x64xf32>
    %29 = vector.broadcast %28 : vector<1x64xf32> to vector<16x64xf32>
    %30 = arith.addf %27, %29 : vector<16x64xf32>
    %31 = arith.mulf %30, %30 : vector<16x64xf32>
    %32 = arith.mulf %30, %31 : vector<16x64xf32>
    %cst_14 = arith.constant 4.471500e-02 : f32
    %33 = vector.broadcast %cst_14 : f32 to vector<16x64xf32>
    %34 = arith.mulf %33, %32 : vector<16x64xf32>
    %35 = arith.addf %30, %34 : vector<16x64xf32>
    %cst_15 = arith.constant 0.797884583 : f32
    %36 = vector.broadcast %cst_15 : f32 to vector<16x64xf32>
    %37 = arith.mulf %36, %35 : vector<16x64xf32>
    %38 = math.tanh %37 : vector<16x64xf32>
    %cst_16 = arith.constant 1.000000e+00 : f32
    %39 = vector.broadcast %cst_16 : f32 to vector<16x64xf32>
    %40 = arith.addf %39, %38 : vector<16x64xf32>
    %cst_17 = arith.constant 5.000000e-01 : f32
    %41 = vector.broadcast %cst_17 : f32 to vector<16x64xf32>
    %42 = arith.mulf %41, %40 : vector<16x64xf32>
    %43 = arith.mulf %30, %42 : vector<16x64xf32>
    %44 = arith.truncf %43 : vector<16x64xf32> to vector<16x64xbf16>
    %c0_18 = arith.constant 0 : index
    %c0_19 = arith.constant 0 : index
    %45 = vector.load %arg7[%c0_18, %c0_19] : memref<16x64xbf16, #tpu.memory_space<vmem>>, vector<16x64xbf16>
    tpu.vector_store %arg7[%c0_18, %c0_19], %44 {strides = array<i32>} : memref<16x64xbf16, #tpu.memory_space<vmem>>, vector<16x64xbf16>,
    return
  }
  func.func @transform_0(%arg0: i32, %arg1: i32) -> (i32, i32) {
    %c0_i32 = arith.constant 0 : i32
    %c0_i32_0 = arith.constant 0 : i32
    return %arg0, %c0_i32 : i32, i32
  }
  func.func @transform_1(%arg0: i32, %arg1: i32) -> (i32, i32) {
    %c0_i32 = arith.constant 0 : i32
    %c0_i32_0 = arith.constant 0 : i32
    %c0_i32_1 = arith.constant 0 : i32
    return %c0_i32, %c0_i32_0 : i32, i32
  }
  func.func @transform_2(%arg0: i32, %arg1: i32) -> (i32, i32) {
    %c0_i32 = arith.constant 0 : i32
    %c0_i32_0 = arith.constant 0 : i32
    %c0_i32_1 = arith.constant 0 : i32
    return %c0_i32, %c0_i32_0 : i32, i32
  }
  func.func @transform_3(%arg0: i32, %arg1: i32) -> (i32, i32) {
    %c0_i32 = arith.constant 0 : i32
    %c0_i32_0 = arith.constant 0 : i32
    return %c0_i32, %arg1 : i32, i32
  }
  func.func @transform_4(%arg0: i32, %arg1: i32) -> (i32, i32) {
    %c0_i32 = arith.constant 0 : i32
    %c0_i32_0 = arith.constant 0 : i32
    return %c0_i32, %arg1 : i32, i32
  }
  func.func @transform_5(%arg0: i32, %arg1: i32) -> (i32, i32) {
    %c0_i32 = arith.constant 0 : i32
    return %arg0, %arg1 : i32, i32
  }
}

module attributes {stable_mosaic.version = 11 : i64} {
  func.func @_matmul_kernel(%arg0: i32, %arg1: i32, %arg2: memref<16x64xbf16, #tpu.memory_space<vmem>>, %arg3: memref<64x32xbf16, #tpu.memory_space<vmem>>, %arg4: memref<1x32xf32, #tpu.memory_space<vmem>>, %arg5: memref<16x32xf32, #tpu.memory_space<vmem>>, %arg6: memref<16x32xf32, #tpu.memory_space<vmem>>) attributes {dimension_semantics = [#tpu.dimension_semantics<parallel>, #tpu.dimension_semantics<parallel>], iteration_bounds = array<i64: 1, 1>, scalar_prefetch = 0 : i64, scratch_operands = 0 : i64, tpu.core_type = #tpu.core_type<tc>, window_params = [{transform_indices = @transform_0, window_bounds = array<i64: 16, 64>}, {transform_indices = @transform_1, window_bounds = array<i64: 64, 32>}, {transform_indices = @transform_2, window_bounds = array<i64: 1, 32>}, {transform_indices = @transform_3, window_bounds = array<i64: 16, 32>}, {transform_indices = @transform_4, window_bounds = array<i64: 16, 32>}]} {
    %c0 = arith.constant 0 : index
    %c0_0 = arith.constant 0 : index
    %0 = vector.load %arg2[%c0, %c0_0] : memref<16x64xbf16, #tpu.memory_space<vmem>>, vector<16x64xbf16>
    %c0_1 = arith.constant 0 : index
    %c0_2 = arith.constant 0 : index
    %1 = vector.load %arg3[%c0_1, %c0_2] : memref<64x32xbf16, #tpu.memory_space<vmem>>, vector<64x32xbf16>
    %cst = arith.constant dense<0.000000e+00> : vector<16x32xf32>
    %2 = tpu.matmul %0, %1, %cst {dimension_numbers = #tpu.dot_dimension_numbers<[1], [0], [0], [1], [0, 0, 1, 1], [], []>} : vector<16x64xbf16>, vector<64x32xbf16>, vector<16x32xf32> -> vector<16x32xf32>
    %c0_3 = arith.constant 0 : index
    %c0_4 = arith.constant 0 : index
    %3 = vector.load %arg4[%c0_3, %c0_4] : memref<1x32xf32, #tpu.memory_space<vmem>>, vector<1x32xf32>
    %4 = vector.broadcast %3 : vector<1x32xf32> to vector<16x32xf32>
    %5 = arith.addf %2, %4 : vector<16x32xf32>
    %c0_5 = arith.constant 0 : index
    %c0_6 = arith.constant 0 : index
    %6 = vector.load %arg5[%c0_5, %c0_6] : memref<16x32xf32, #tpu.memory_space<vmem>>, vector<16x32xf32>
    %7 = arith.addf %5, %6 : vector<16x32xf32>
    %c0_7 = arith.constant 0 : index
    %c0_8 = arith.constant 0 : index
    %8 = vector.load %arg6[%c0_7, %c0_8] : memref<16x32xf32, #tpu.memory_space<vmem>>, vector<16x32xf32>
    tpu.vector_store %arg6[%c0_7, %c0_8], %7 {strides = array<i32>} : memref<16x32xf32, #tpu.memory_space<vmem>>, vector<16x32xf32>,
    return
  }
  func.func @transform_0(%arg0: i32, %arg1: i32) -> (i32, i32) {
    %c0_i32 = arith.constant 0 : i32
    %c0_i32_0 = arith.constant 0 : i32
    return %arg0, %c0_i32 : i32, i32
  }
  func.func @transform_1(%arg0: i32, %arg1: i32) -> (i32, i32) {
    %c0_i32 = arith.constant 0 : i32
    %c0_i32_0 = arith.constant 0 : i32
    return %c0_i32, %arg1 : i32, i32
  }
  func.func @transform_2(%arg0: i32, %arg1: i32) -> (i32, i32) {
    %c0_i32 = arith.constant 0 : i32
    %c0_i32_0 = arith.constant 0 : i32
    return %c0_i32, %arg1 : i32, i32
  }
  func.func @transform_3(%arg0: i32, %arg1: i32) -> (i32, i32) {
    %c0_i32 = arith.constant 0 : i32
    return %arg0, %arg1 : i32, i32
  }
  func.func @transform_4(%arg0: i32, %arg1: i32) -> (i32, i32) {
    %c0_i32 = arith.constant 0 : i32
    return %arg0, %arg1 : i32, i32
  }
}

module attributes {stable_mosaic.version = 11 : i64} {
  func.func @_matmul_kernel(%arg0: i32, %arg1: i32, %arg2: memref<16x64xbf16, #tpu.memory_space<vmem>>, %arg3: memref<64x32xbf16, #tpu.memory_space<vmem>>, %arg4: memref<1x32xf32, #tpu.memory_space<vmem>>, %arg5: memref<16x32xf32, #tpu.memory_space<vmem>>, %arg6: memref<16x32xf32, #tpu.memory_space<vmem>>) attributes {dimension_semantics = [#tpu.dimension_semantics<parallel>, #tpu.dimension_semantics<parallel>], iteration_bounds = array<i64: 1, 1>, scalar_prefetch = 0 : i64, scratch_operands = 0 : i64, tpu.core_type = #tpu.core_type<tc>, window_params = [{transform_indices = @transform_0, window_bounds = array<i64: 16, 64>}, {transform_indices = @transform_1, window_bounds = array<i64: 64, 32>}, {transform_indices = @transform_2, window_bounds = array<i64: 1, 32>}, {transform_indices = @transform_3, window_bounds = array<i64: 16, 32>}, {transform_indices = @transform_4, window_bounds = array<i64: 16, 32>}]} {
    %c0 = arith.constant 0 : index
    %c0_0 = arith.constant 0 : index
    %0 = vector.load %arg2[%c0, %c0_0] : memref<16x64xbf16, #tpu.memory_space<vmem>>, vector<16x64xbf16>
    %c0_1 = arith.constant 0 : index
    %c0_2 = arith.constant 0 : index
    %1 = vector.load %arg3[%c0_1, %c0_2] : memref<64x32xbf16, #tpu.memory_space<vmem>>, vector<64x32xbf16>
    %cst = arith.constant dense<0.000000e+00> : vector<16x32xf32>
    %2 = tpu.matmul %0, %1, %cst {dimension_numbers = #tpu.dot_dimension_numbers<[1], [0], [0], [1], [0, 0, 1, 1], [], []>} : vector<16x64xbf16>, vector<64x32xbf16>, vector<16x32xf32> -> vector<16x32xf32>
    %c0_3 = arith.constant 0 : index
    %c0_4 = arith.constant 0 : index
    %3 = vector.load %arg4[%c0_3, %c0_4] : memref<1x32xf32, #tpu.memory_space<vmem>>, vector<1x32xf32>
    %4 = vector.broadcast %3 : vector<1x32xf32> to vector<16x32xf32>
    %5 = arith.addf %2, %4 : vector<16x32xf32>
    %c0_5 = arith.constant 0 : index
    %c0_6 = arith.constant 0 : index
    %6 = vector.load %arg5[%c0_5, %c0_6] : memref<16x32xf32, #tpu.memory_space<vmem>>, vector<16x32xf32>
    %7 = arith.addf %5, %6 : vector<16x32xf32>
    %c0_7 = arith.constant 0 : index
    %c0_8 = arith.constant 0 : index
    %8 = vector.load %arg6[%c0_7, %c0_8] : memref<16x32xf32, #tpu.memory_space<vmem>>, vector<16x32xf32>
    tpu.vector_store %arg6[%c0_7, %c0_8], %7 {strides = array<i32>} : memref<16x32xf32, #tpu.memory_space<vmem>>, vector<16x32xf32>,
    return
  }
  func.func @transform_0(%arg0: i32, %arg1: i32) -> (i32, i32) {
    %c0_i32 = arith.constant 0 : i32
    %c0_i32_0 = arith.constant 0 : i32
    return %arg0, %c0_i32 : i32, i32
  }
  func.func @transform_1(%arg0: i32, %arg1: i32) -> (i32, i32) {
    %c0_i32 = arith.constant 0 : i32
    %c0_i32_0 = arith.constant 0 : i32
    return %c0_i32, %arg1 : i32, i32
  }
  func.func @transform_2(%arg0: i32, %arg1: i32) -> (i32, i32) {
    %c0_i32 = arith.constant 0 : i32
    %c0_i32_0 = arith.constant 0 : i32
    return %c0_i32, %arg1 : i32, i32
  }
  func.func @transform_3(%arg0: i32, %arg1: i32) -> (i32, i32) {
    %c0_i32 = arith.constant 0 : i32
    return %arg0, %arg1 : i32, i32
  }
  func.func @transform_4(%arg0: i32, %arg1: i32) -> (i32, i32) {
    %c0_i32 = arith.constant 0 : i32
    return %arg0, %arg1 : i32, i32
  }
}

</mosaic_0001>

<bundles_post_ra>
// kernel: encoder_forward.12
= control target key start
LH: loop header
LB: loop body
LE: loop exit
PB: predicated region body
PF: predicated region fallthrough
CT: control target
= control target key end

     0   :  { %vm48_vm0 = vcmask 195584   ;;  %vm55_vm1 = vcmask 1043456   ;;  %vm160_vm2 = vcmask 257024   ;;  %s256_s1 = inlined_call_operand.vmem [shape: bf16[24,32], index: 1, kind: input, shape index: {}]   ;;  %s257_s0 = inlined_call_operand.vmem [shape: bf16[32,24], index: 0, kind: input, shape index: {}]   ;;  %s258_s2 = inlined_call_operand.vmem [shape: f32[1,32], index: 2, kind: input, shape index: {}]   ;;  %s259_s3 = inlined_call_operand.vmem [shape: bf16[32,32], index: 3, kind: output, shape index: {}]  }
   0x1   :  { %v197_v0 = vld [vmem:[%s256_s1] sm:$0xff]   ;;  %v198_v1 = vld [vmem:[%s256_s1 + $0x8] ss:$0 sps:$4 sm:$0xff]  }
   0x2   :  { %v199_v2 = vld [vmem:[%s257_s0] sm:$0xff]   ;;  %188 = vmatprep.subr.bf16.mxu0 %v197_v0  ;;  %v57_v3 = vsel %vm55_vm1, %v198_v1, 0  ;;  %v200_v4 = vld [vmem:[%s257_s0 + $0x8] sm:$0xff]  }
   0x3   :  { %189 = vmatpush3.bf16.msra.mxu0 %v197_v0  ;;  %192 = vmatprep.mubr.msk.bf16.mxu0 %vm48_vm0, %v199_v2  ;;  %v169_v5 = vld [vmem:[%s258_s2] ss:$0 sm:$0xff] }
   0x4   :  { %196 = vmatprep.subr.msk.bf16.mxu0 %vm55_vm1, %v198_v1 }
   0x7   :  { %191 = vmatpush3.bf16.msra.mxu0 %v57_v3 }
   0xa   :  { %193 = vmatmul.mubr.msk.bf16.vlgmr.msra.gmra.mrb[0].mxu0 %vm48_vm0, %v200_v4 }
  0xdd   :  { %v194_v6 = vpop.f32.mrb[0].mxu0 }
  0xde   :  { %v102_v7 = vadd.f32 %v194_v6, %v169_v5  ;;  %v93_v8 = vpop.f32.mrb[1].mxu0 }
  0xdf   :  { %v94_v9 = vadd.f32 %v169_v5, %v93_v8  ;;  %v195_v10 = vpop.f32.mrb[2].mxu0 }
  0xe0   :  { %v110_v11 = vmul.f32 %v102_v7, %v102_v7  ;;  %v105_v12 = vadd.f32 %v195_v10, %v169_v5  ;;  %v96_v13 = vpop.f32.mrb[3].mxu0 }
  0xe1   :  { %v108_v14 = vmul.f32 %v94_v9, %v94_v9  ;;  %v97_v15 = vadd.f32 %v169_v5, %v96_v13 }
  0xe2   :  { %v114_v16 = vmul.f32 %v110_v11, %v102_v7  ;;  %v111_v17 = vmul.f32 %v105_v12, %v105_v12 }
  0xe3   :  { %v112_v18 = vmul.f32 %v108_v14, %v94_v9  ;;  %v109_v19 = vmul.f32 %v97_v15, %v97_v15 }
  0xe4   :  { %v118_v20 = vmul.f32 0.044715, %v114_v16  ;;  %v115_v21 = vmul.f32 %v111_v17, %v105_v12 }
  0xe5   :  { %v116_v22 = vmul.f32 0.044715, %v112_v18  ;;  %v113_v23 = vmul.f32 %v109_v19, %v97_v15 }
  0xe6   :  { %v122_v24 = vadd.f32 %v118_v20, %v102_v7  ;;  %v119_v25 = vmul.f32 0.044715, %v115_v21 }
  0xe7   :  { %v120_v26 = vadd.f32 %v116_v22, %v94_v9  ;;  %v117_v27 = vmul.f32 0.044715, %v113_v23 }
  0xe8   :  { %v126_v28 = vmul.f32 0.7978846, %v122_v24  ;;  %v123_v29 = vadd.f32 %v119_v25, %v105_v12 }
  0xe9   :  { %v124_v30 = vmul.f32 0.7978846, %v120_v26  ;;  %v121_v31 = vadd.f32 %v117_v27, %v97_v15 }
  0xea   :  { %201 = vtanh.f32 %v126_v28  ;;  %v127_v32 = vmul.f32 0.7978846, %v123_v29 }
  0xeb   :  { %203 = vtanh.f32 %v124_v30  ;;  %v125_v33 = vmul.f32 0.7978846, %v121_v31 }
  0xec   :  { %205 = vtanh.f32 %v127_v32 }
  0xed   :  { %207 = vtanh.f32 %v125_v33 }
  0xf4   :  { %v202_v34 = vpop.eup %201 }
  0xf5   :  { %v204_v35 = vpop.eup %203  ;;  %v134_v36 = vadd.f32 1.0, %v202_v34 }
  0xf6   :  { %v206_v37 = vpop.eup %205  ;;  %v132_v38 = vadd.f32 1.0, %v204_v35 }
  0xf7   :  { %v208_v39 = vpop.eup %207  ;;  %v138_v40 = vmul.f32 0.5, %v134_v36  ;;  %v135_v41 = vadd.f32 1.0, %v206_v37 }
  0xf8   :  { %v136_v42 = vmul.f32 0.5, %v132_v38  ;;  %v133_v43 = vadd.f32 1.0, %v208_v39 }
  0xf9   :  { %v142_v44 = vmul.f32 %v138_v40, %v102_v7  ;;  %v139_v45 = vmul.f32 0.5, %v135_v41 }
  0xfa   :  { %v140_v46 = vmul.f32 %v136_v42, %v94_v9  ;;  %v137_v47 = vmul.f32 0.5, %v133_v43 }
  0xfb   :  { %v182_v48 = vpack.c.bf16 %v142_v44, %v142_v44  ;;  %v143_v49 = vmul.f32 %v139_v45, %v105_v12 }
  0xfc   :  { %v180_v50 = vpack.c.bf16 %v140_v46, %v140_v46  ;;  %v141_v51 = vmul.f32 %v137_v47, %v97_v15 }
  0xfd   :  { %163 = vst.msk [vmem:[%s259_s3 + $0x8] sm:$0xf] %vm160_vm2, %v182_v48  ;;  %v183_v52 = vpack.c.bf16 %v143_v49, %v143_v49 }
  0xfe   :  { %161 = vst.msk [vmem:[%s259_s3] sm:$0xf] %vm160_vm2, %v180_v50  ;;  %v181_v53 = vpack.c.bf16 %v141_v51, %v141_v51 }
  0xff   :  { %164 = vst.msk [vmem:[%s259_s3 + $0xc] sm:$0xf] %vm160_vm2, %v183_v52 }
 0x100   :  { %162 = vst.msk [vmem:[%s259_s3 + $0x4] sm:$0xf] %vm160_vm2, %v181_v53 }

// kernel: encoder_forward.13
= control target key start
LH: loop header
LB: loop body
LE: loop exit
PB: predicated region body
PF: predicated region fallthrough
CT: control target
= control target key end

     0   :  { %v192_v0 = vmov 0.0   ;;  %vm193_vm0 = vmmov 0   ;;  %vm77_vm1 = vcmask 785408   ;;  %vm140_vm2 = vcmask 261120   ;;  %s244_s1 = inlined_call_operand.vmem [shape: bf16[96,32], index: 1, kind: input, shape index: {}]   ;;  %s245_s0 = inlined_call_operand.vmem [shape: bf16[16,96], index: 0, kind: input, shape index: {}]   ;;  %s246_s2 = inlined_call_operand.vmem [shape: f32[1,32], index: 2, kind: input, shape index: {}]   ;;  %s247_s3 = inlined_call_operand.vmem [shape: f32[16,32], index: 3, kind: output, shape index: {}]  }
   0x1   :  { %163 = vmatprep.subr.bf16.mxu0 %v192_v0  ;;  %v181_v1 = vld [vmem:[%s244_s1] sm:$0xff]   ;;  %175 = vmatprep.mubr.msk.bf16.mxu0 %vm193_vm0, %v192_v0  ;;  %v182_v2 = vld [vmem:[%s244_s1 + $0x8] sm:$0xff]   ;;  %v183_v3 = vld [vmem:[%s244_s1 + $0x10] sm:$0xff]  }
   0x2   :  { %164 = vmatpush3.bf16.msra.mxu0 %v181_v1  ;;  %v184_v4 = vld [vmem:[%s244_s1 + $0x18] sm:$0xff]   ;;  %v185_v5 = vld [vmem:[%s244_s1 + $0x20] sm:$0xff]   ;;  %v186_v6 = vld [vmem:[%s244_s1 + $0x28] sm:$0xff]  }
   0x3   :  { %165 = vmatprep.subr.bf16.mxu0 %v192_v0  ;;  %v187_v7 = vld [vmem:[%s245_s0] sm:$0xff]  }
   0x4   :  { %v147_v8 = vld [vmem:[%s246_s2] ss:$0 sm:$0xff] }
   0x6   :  { %166 = vmatpush3.bf16.msra.mxu0 %v182_v2 }
   0x7   :  { %167 = vmatprep.subr.bf16.mxu0 %v192_v0 }
   0xa   :  { %168 = vmatpush3.bf16.msra.mxu0 %v183_v3 }
   0xb   :  { %169 = vmatprep.subr.bf16.mxu0 %v192_v0 }
   0xe   :  { %170 = vmatpush3.bf16.msra.mxu0 %v184_v4 }
   0xf   :  { %171 = vmatprep.subr.bf16.mxu0 %v192_v0 }
  0x12   :  { %172 = vmatpush3.bf16.msra.mxu0 %v185_v5 }
  0x13   :  { %173 = vmatprep.subr.bf16.mxu0 %v192_v0 }
  0x16   :  { %174 = vmatpush3.bf16.msra.mxu0 %v186_v6 }
  0x19   :  { %176 = vmatmul.mubr.msk.bf16.vlgmr.msra.gmra.mrb[0].mxu0 %vm77_vm1, %v187_v7 }
  0xec   :  { %v115_v9 = vpop.f32.mrb[0].mxu0 }
  0xed   :  { %v116_v10 = vadd.f32 %v147_v8, %v115_v9  ;;  %v177_v11 = vpop.f32.mrb[1].mxu0 }
  0xee   :  { %v118_v12 = vpop.f32.mrb[2].mxu0 }
  0xef   :  { %v122_v13 = vmul.f32 %v116_v10, %v116_v10  ;;  %v119_v14 = vadd.f32 %v147_v8, %v118_v12  ;;  %v178_v15 = vpop.f32.mrb[3].mxu0 }
  0xf1   :  { %v124_v16 = vmul.f32 %v122_v13, %v116_v10  ;;  %v123_v17 = vmul.f32 %v119_v14, %v119_v14 }
  0xf3   :  { %v126_v18 = vmul.f32 0.044715, %v124_v16  ;;  %v125_v19 = vmul.f32 %v123_v17, %v119_v14 }
  0xf5   :  { %v128_v20 = vadd.f32 %v126_v18, %v116_v10  ;;  %v127_v21 = vmul.f32 0.044715, %v125_v19 }
  0xf7   :  { %v130_v22 = vmul.f32 0.7978846, %v128_v20  ;;  %v129_v23 = vadd.f32 %v127_v21, %v119_v14 }
  0xf9   :  { %188 = vtanh.f32 %v130_v22  ;;  %v131_v24 = vmul.f32 0.7978846, %v129_v23 }
  0xfb   :  { %190 = vtanh.f32 %v131_v24 }
 0x103   :  { %v189_v25 = vpop.eup %188 }
 0x104   :  { %v134_v26 = vadd.f32 1.0, %v189_v25 }
 0x105   :  { %v191_v27 = vpop.eup %190 }
 0x106   :  { %v136_v28 = vmul.f32 0.5, %v134_v26  ;;  %v135_v29 = vadd.f32 1.0, %v191_v27 }
 0x108   :  { %v138_v30 = vmul.f32 %v136_v28, %v116_v10  ;;  %v137_v31 = vmul.f32 0.5, %v135_v29 }
 0x10a   :  { %141 = vst.msk [vmem:[%s247_s3] sm:$0xff] %vm140_vm2, %v138_v30  ;;  %v139_v32 = vmul.f32 %v137_v31, %v119_v14 }
 0x10c   :  { %142 = vst.msk [vmem:[%s247_s3 + $0x8] sm:$0xff] %vm140_vm2, %v139_v32 }

// kernel: encoder_forward.14
= control target key start
LH: loop header
LB: loop body
LE: loop exit
PB: predicated region body
PF: predicated region fallthrough
CT: control target
= control target key end

     0   :  { %vm23_vm0 = vcmask 261120   ;;  %v181_v15 = vmov 0.0   ;;  %vm182_vm1 = vmmov 0   ;;  %vm145_vm2 = vcmask 781312   ;;  %s245_s0 = inlined_call_operand.vmem [shape: f32[16,32], index: 0, kind: input, shape index: {}]   ;;  %s246_s3 = inlined_call_operand.vmem [shape: bf16[32,96], index: 3, kind: input, shape index: {}]   ;;  %s247_s1 = inlined_call_operand.vmem [shape: f32[1,32], index: 1, kind: input, shape index: {}]   ;;  %s248_s2 = inlined_call_operand.vmem [shape: f32[1,32], index: 2, kind: input, shape index: {}]   ;;  %s249_s4 = inlined_call_operand.vmem [shape: f32[1,96], index: 4, kind: input, shape index: {}]   ;;  %s250_s5 = inlined_call_operand.vmem [shape: bf16[16,96], index: 5, kind: output, shape index: {}]  }
   0x1   :  { %v21_v0 = vld [vmem:[%s245_s0] sm:$0xff]  ;;  %v22_v1 = vld [vmem:[%s245_s0 + $0x8] sm:$0xff]  ;;  %165 = vmatprep.subr.bf16.mxu0 %v181_v15  ;;  %169 = vmatprep.mubr.msk.bf16.mxu0 %vm182_vm1, %v181_v15 }
   0x2   :  { %v24_v2 = vsel %vm23_vm0, %v21_v0, 0.0  ;;  %v27_v3 = vsel %vm23_vm0, %v22_v1, 0.0  ;;  %v175_v14 = vld [vmem:[%s246_s3] sm:$0xff]   ;;  %v176_v16 = vld [vmem:[%s246_s3 + $0x8] sm:$0xff]  }
   0x3   :  { %25 = vadd.xlane.f32.xlu0 %v24_v2  ;;  %166 = vmatpush3.bf16.msra.mxu0 %v175_v14  ;;  %v152_v25 = vld [vmem:[%s247_s1] ss:$0 sm:$0xff] }
   0x4   :  { %167 = vmatprep.subr.bf16.mxu0 %v181_v15  ;;  %v153_v29 = vld [vmem:[%s248_s2] ss:$0 sm:$0xff] }
   0x5   :  { %v154_v34 = vld [vmem:[%s249_s4] ss:$0 sm:$0xff] }
   0x7   :  { %28 = vadd.xlane.f32.xlu0 %v27_v3  ;;  %168 = vmatpush3.bf16.msra.mxu0 %v176_v16 }
  0x90   :  { %v26_v4 = vpop.xlane.xlu0 %25 }
  0x91   :  { %v31_v5 = vmul.f32 0.03125, %v26_v4 }
  0x93   :  { %v33_v6 = vsub.f32 %v21_v0, %v31_v5 }
  0x94   :  { %v29_v7 = vpop.xlane.xlu0 %28 }
  0x95   :  { %v32_v8 = vmul.f32 0.03125, %v29_v7  ;;  %v35_v9 = vmul.f32 %v33_v6, %v33_v6 }
  0x97   :  { %v34_v10 = vsub.f32 %v22_v1, %v32_v8  ;;  %v37_v11 = vsel %vm23_vm0, %v35_v9, 0.0 }
  0x98   :  { %38 = vadd.xlane.f32.xlu1 %v37_v11 }
  0x99   :  { %v36_v12 = vmul.f32 %v34_v10, %v34_v10 }
  0x9b   :  { %v40_v13 = vsel %vm23_vm0, %v36_v12, 0.0 }
  0x9c   :  { %41 = vadd.xlane.f32.xlu1 %v40_v13 }
 0x125   :  { %v39_v17 = vpop.xlane.xlu1 %38 }
 0x126   :  { %v43_v18 = vmul.f32 0.03125, %v39_v17 }
 0x128   :  { %v45_v19 = vadd.f32 1e-05, %v43_v18 }
 0x129   :  { %v42_v20 = vpop.xlane.xlu1 %41 }
 0x12a   :  { %177 = vrsqrt.f32 %v45_v19  ;;  %v44_v21 = vmul.f32 0.03125, %v42_v20 }
 0x12c   :  { %v46_v22 = vadd.f32 1e-05, %v44_v21 }
 0x12e   :  { %179 = vrsqrt.f32 %v46_v22 }
 0x134   :  { %v178_v23 = vpop.eup %177 }
 0x135   :  { %v49_v24 = vmul.f32 %v178_v23, %v33_v6 }
 0x137   :  { %v58_v28 = vmul.f32 %v152_v25, %v49_v24 }
 0x138   :  { %v180_v26 = vpop.eup %179 }
 0x139   :  { %v50_v27 = vmul.f32 %v180_v26, %v34_v10  ;;  %v67_v31 = vadd.f32 %v153_v29, %v58_v28 }
 0x13b   :  { %v59_v30 = vmul.f32 %v152_v25, %v50_v27 }
 0x13d   :  { %v68_v32 = vadd.f32 %v153_v29, %v59_v30 }
 0x13f   :  { %v69_v33 = vpack.c.bf16 %v68_v32, %v67_v31 }
 0x141   :  { %170 = vmatmul.mubr.msk.bf16.vlgmr.msra.gmra.mrb[0].mxu0 %vm23_vm0, %v69_v33 }
 0x214   :  { %v130_v35 = vpop.f32.mrb[0].mxu0 }
 0x215   :  { %v131_v36 = vadd.f32 %v154_v34, %v130_v35  ;;  %v171_v37 = vpop.f32.mrb[1].mxu0 }
 0x216   :  { %v133_v38 = vpop.f32.mrb[2].mxu0 }
 0x217   :  { %v160_v39 = vpack.c.bf16 %v131_v36, %v131_v36  ;;  %v134_v40 = vadd.f32 %v154_v34, %v133_v38  ;;  %v172_v41 = vpop.f32.mrb[3].mxu0 }
 0x219   :  { %146 = vst.msk [vmem:[%s250_s5] sm:$0xf] %vm145_vm2, %v160_v39  ;;  %v161_v42 = vpack.c.bf16 %v134_v40, %v134_v40 }
 0x21b   :  { %147 = vst.msk [vmem:[%s250_s5 + $0x4] sm:$0xf] %vm145_vm2, %v161_v42 }

// kernel: encoder_forward.16
= control target key start
LH: loop header
LB: loop body
LE: loop exit
PB: predicated region body
PF: predicated region fallthrough
CT: control target
= control target key end

     0   :  { %v124_v0 = vmov 0.0   ;;  %vm125_vm0 = vmmov 0   ;;  %vm48_vm1 = vcmask 261120   ;;  %s178_s1 = inlined_call_operand.vmem [shape: bf16[32,32], index: 1, kind: input, shape index: {}]   ;;  %s179_s0 = inlined_call_operand.vmem [shape: bf16[16,32], index: 0, kind: input, shape index: {}]   ;;  %s180_s2 = inlined_call_operand.vmem [shape: f32[1,32], index: 2, kind: input, shape index: {}]   ;;  %s181_s3 = inlined_call_operand.vmem [shape: f32[16,32], index: 3, kind: input, shape index: {}]   ;;  %s182_s4 = inlined_call_operand.vmem [shape: f32[16,32], index: 4, kind: output, shape index: {}]  }
   0x1   :  { %111 = vmatprep.subr.bf16.mxu0 %v124_v0  ;;  %v121_v1 = vld [vmem:[%s178_s1] sm:$0xff]   ;;  %115 = vmatprep.mubr.msk.bf16.mxu0 %vm125_vm0, %v124_v0  ;;  %v122_v2 = vld [vmem:[%s178_s1 + $0x8] sm:$0xff]  }
   0x2   :  { %112 = vmatpush3.bf16.msra.mxu0 %v121_v1  ;;  %v123_v3 = vld [vmem:[%s179_s0] sm:$0xff]   ;;  %v94_v10 = vld [vmem:[%s181_s3 + $0x8] sm:$0xff] }
   0x3   :  { %113 = vmatprep.subr.bf16.mxu0 %v124_v0  ;;  %v103_v4 = vld [vmem:[%s180_s2] ss:$0 sm:$0xff] }
   0x4   :  { %v93_v6 = vld [vmem:[%s181_s3] sm:$0xff] }
   0x6   :  { %114 = vmatpush3.bf16.msra.mxu0 %v122_v2 }
   0x9   :  { %116 = vmatmul.mubr.msk.bf16.vlgmr.msra.gmra.mrb[0].mxu0 %vm48_vm1, %v123_v3 }
  0xdc   :  { %v86_v5 = vpop.f32.mrb[0].mxu0 }
  0xdd   :  { %v87_v7 = vadd.f32 %v103_v4, %v86_v5  ;;  %v117_v8 = vpop.f32.mrb[1].mxu0 }
  0xde   :  { %v89_v9 = vpop.f32.mrb[2].mxu0 }
  0xdf   :  { %v95_v11 = vadd.f32 %v93_v6, %v87_v7  ;;  %v90_v12 = vadd.f32 %v103_v4, %v89_v9  ;;  %v118_v13 = vpop.f32.mrb[3].mxu0 }
  0xe1   :  { %97 = vst.msk [vmem:[%s182_s4] sm:$0xff] %vm48_vm1, %v95_v11  ;;  %v96_v14 = vadd.f32 %v94_v10, %v90_v12 }
  0xe3   :  { %98 = vst.msk [vmem:[%s182_s4 + $0x8] sm:$0xff] %vm48_vm1, %v96_v14 }

// kernel: encoder_forward.17
= control target key start
LH: loop header
LB: loop body
LE: loop exit
PB: predicated region body
PF: predicated region fallthrough
CT: control target
= control target key end

     0   :  { %vm23_vm0 = vcmask 261120   ;;  %v203_v15 = vmov 0.0   ;;  %vm204_vm1 = vmmov 0   ;;  %vm163_vm2 = vcmask 519168   ;;  %s267_s0 = inlined_call_operand.vmem [shape: f32[16,32], index: 0, kind: input, shape index: {}]   ;;  %s268_s3 = inlined_call_operand.vmem [shape: bf16[32,64], index: 3, kind: input, shape index: {}]   ;;  %s269_s1 = inlined_call_operand.vmem [shape: f32[1,32], index: 1, kind: input, shape index: {}]   ;;  %s270_s2 = inlined_call_operand.vmem [shape: f32[1,32], index: 2, kind: input, shape index: {}]   ;;  %s271_s4 = inlined_call_operand.vmem [shape: f32[1,64], index: 4, kind: input, shape index: {}]   ;;  %s272_s5 = inlined_call_operand.vmem [shape: bf16[16,64], index: 5, kind: output, shape index: {}]  }
   0x1   :  { %v21_v0 = vld [vmem:[%s267_s0] sm:$0xff]  ;;  %v22_v1 = vld [vmem:[%s267_s0 + $0x8] sm:$0xff]  ;;  %183 = vmatprep.subr.bf16.mxu0 %v203_v15  ;;  %187 = vmatprep.mubr.msk.bf16.mxu0 %vm204_vm1, %v203_v15 }
   0x2   :  { %v24_v2 = vsel %vm23_vm0, %v21_v0, 0.0  ;;  %v27_v3 = vsel %vm23_vm0, %v22_v1, 0.0  ;;  %v193_v14 = vld [vmem:[%s268_s3] sm:$0xff]   ;;  %v194_v16 = vld [vmem:[%s268_s3 + $0x8] sm:$0xff]  }
   0x3   :  { %25 = vadd.xlane.f32.xlu0 %v24_v2  ;;  %184 = vmatpush3.bf16.msra.mxu0 %v193_v14  ;;  %v170_v25 = vld [vmem:[%s269_s1] ss:$0 sm:$0xff] }
   0x4   :  { %185 = vmatprep.subr.bf16.mxu0 %v203_v15  ;;  %v171_v29 = vld [vmem:[%s270_s2] ss:$0 sm:$0xff] }
   0x5   :  { %v172_v34 = vld [vmem:[%s271_s4] ss:$0 sm:$0xff] }
   0x7   :  { %28 = vadd.xlane.f32.xlu0 %v27_v3  ;;  %186 = vmatpush3.bf16.msra.mxu0 %v194_v16 }
  0x90   :  { %v26_v4 = vpop.xlane.xlu0 %25 }
  0x91   :  { %v31_v5 = vmul.f32 0.03125, %v26_v4 }
  0x93   :  { %v33_v6 = vsub.f32 %v21_v0, %v31_v5 }
  0x94   :  { %v29_v7 = vpop.xlane.xlu0 %28 }
  0x95   :  { %v32_v8 = vmul.f32 0.03125, %v29_v7  ;;  %v35_v9 = vmul.f32 %v33_v6, %v33_v6 }
  0x97   :  { %v34_v10 = vsub.f32 %v22_v1, %v32_v8  ;;  %v37_v11 = vsel %vm23_vm0, %v35_v9, 0.0 }
  0x98   :  { %38 = vadd.xlane.f32.xlu1 %v37_v11 }
  0x99   :  { %v36_v12 = vmul.f32 %v34_v10, %v34_v10 }
  0x9b   :  { %v40_v13 = vsel %vm23_vm0, %v36_v12, 0.0 }
  0x9c   :  { %41 = vadd.xlane.f32.xlu1 %v40_v13 }
 0x125   :  { %v39_v17 = vpop.xlane.xlu1 %38 }
 0x126   :  { %v43_v18 = vmul.f32 0.03125, %v39_v17 }
 0x128   :  { %v45_v19 = vadd.f32 1e-05, %v43_v18 }
 0x129   :  { %v42_v20 = vpop.xlane.xlu1 %41 }
 0x12a   :  { %195 = vrsqrt.f32 %v45_v19  ;;  %v44_v21 = vmul.f32 0.03125, %v42_v20 }
 0x12c   :  { %v46_v22 = vadd.f32 1e-05, %v44_v21 }
 0x12e   :  { %197 = vrsqrt.f32 %v46_v22 }
 0x134   :  { %v196_v23 = vpop.eup %195 }
 0x135   :  { %v49_v24 = vmul.f32 %v196_v23, %v33_v6 }
 0x137   :  { %v58_v28 = vmul.f32 %v170_v25, %v49_v24 }
 0x138   :  { %v198_v26 = vpop.eup %197 }
 0x139   :  { %v50_v27 = vmul.f32 %v198_v26, %v34_v10  ;;  %v67_v31 = vadd.f32 %v171_v29, %v58_v28 }
 0x13b   :  { %v59_v30 = vmul.f32 %v170_v25, %v50_v27 }
 0x13d   :  { %v68_v32 = vadd.f32 %v171_v29, %v59_v30 }
 0x13f   :  { %v69_v33 = vpack.c.bf16 %v68_v32, %v67_v31 }
 0x141   :  { %188 = vmatmul.mubr.msk.bf16.vlgmr.msra.gmra.mrb[0].mxu0 %vm23_vm0, %v69_v33 }
 0x214   :  { %v130_v35 = vpop.f32.mrb[0].mxu0 }
 0x215   :  { %v131_v36 = vadd.f32 %v172_v34, %v130_v35  ;;  %v189_v37 = vpop.f32.mrb[1].mxu0 }
 0x216   :  { %v133_v38 = vpop.f32.mrb[2].mxu0 }
 0x217   :  { %v137_v39 = vmul.f32 %v131_v36, %v131_v36  ;;  %v134_v40 = vadd.f32 %v172_v34, %v133_v38  ;;  %v190_v41 = vpop.f32.mrb[3].mxu0 }
 0x219   :  { %v139_v42 = vmul.f32 %v137_v39, %v131_v36  ;;  %v138_v43 = vmul.f32 %v134_v40, %v134_v40 }
 0x21b   :  { %v141_v44 = vmul.f32 0.044715, %v139_v42  ;;  %v140_v45 = vmul.f32 %v138_v43, %v134_v40 }
 0x21d   :  { %v143_v46 = vadd.f32 %v141_v44, %v131_v36  ;;  %v142_v47 = vmul.f32 0.044715, %v140_v45 }
 0x21f   :  { %v145_v48 = vmul.f32 0.7978846, %v143_v46  ;;  %v144_v49 = vadd.f32 %v142_v47, %v134_v40 }
 0x221   :  { %199 = vtanh.f32 %v145_v48  ;;  %v146_v50 = vmul.f32 0.7978846, %v144_v49 }
 0x223   :  { %201 = vtanh.f32 %v146_v50 }
 0x22b   :  { %v200_v51 = vpop.eup %199 }
 0x22c   :  { %v149_v52 = vadd.f32 1.0, %v200_v51 }
 0x22d   :  { %v202_v53 = vpop.eup %201 }
 0x22e   :  { %v151_v54 = vmul.f32 0.5, %v149_v52  ;;  %v150_v55 = vadd.f32 1.0, %v202_v53 }
 0x230   :  { %v153_v56 = vmul.f32 %v151_v54, %v131_v36  ;;  %v152_v57 = vmul.f32 0.5, %v150_v55 }
 0x232   :  { %v178_v58 = vpack.c.bf16 %v153_v56, %v153_v56  ;;  %v154_v59 = vmul.f32 %v152_v57, %v134_v40 }
 0x234   :  { %164 = vst.msk [vmem:[%s272_s5] sm:$0xf] %vm163_vm2, %v178_v58  ;;  %v179_v60 = vpack.c.bf16 %v154_v59, %v154_v59 }
 0x236   :  { %165 = vst.msk [vmem:[%s272_s5 + $0x4] sm:$0xf] %vm163_vm2, %v179_v60 }

// kernel: encoder_forward.18
= control target key start
LH: loop header
LB: loop body
LE: loop exit
PB: predicated region body
PF: predicated region fallthrough
CT: control target
= control target key end

     0   :  { %v151_v0 = vmov 0.0   ;;  %vm152_vm0 = vmmov 0   ;;  %vm64_vm1 = vcmask 523264   ;;  %vm113_vm2 = vcmask 261120   ;;  %s208_s1 = inlined_call_operand.vmem [shape: bf16[64,32], index: 1, kind: input, shape index: {}]   ;;  %s209_s0 = inlined_call_operand.vmem [shape: bf16[16,64], index: 0, kind: input, shape index: {}]   ;;  %s210_s2 = inlined_call_operand.vmem [shape: f32[1,32], index: 2, kind: input, shape index: {}]   ;;  %s211_s3 = inlined_call_operand.vmem [shape: f32[16,32], index: 3, kind: input, shape index: {}]   ;;  %s212_s4 = inlined_call_operand.vmem [shape: f32[16,32], index: 4, kind: output, shape index: {}]  }
   0x1   :  { %132 = vmatprep.subr.bf16.mxu0 %v151_v0  ;;  %v146_v1 = vld [vmem:[%s208_s1] sm:$0xff]   ;;  %140 = vmatprep.mubr.msk.bf16.mxu0 %vm152_vm0, %v151_v0  ;;  %v147_v2 = vld [vmem:[%s208_s1 + $0x8] sm:$0xff]   ;;  %v148_v3 = vld [vmem:[%s208_s1 + $0x10] sm:$0xff]  }
   0x2   :  { %133 = vmatpush3.bf16.msra.mxu0 %v146_v1  ;;  %v149_v4 = vld [vmem:[%s208_s1 + $0x18] sm:$0xff]   ;;  %v150_v5 = vld [vmem:[%s209_s0] sm:$0xff]   ;;  %v110_v12 = vld [vmem:[%s211_s3 + $0x8] sm:$0xff] }
   0x3   :  { %134 = vmatprep.subr.bf16.mxu0 %v151_v0  ;;  %v120_v6 = vld [vmem:[%s210_s2] ss:$0 sm:$0xff] }
   0x4   :  { %v109_v8 = vld [vmem:[%s211_s3] sm:$0xff] }
   0x6   :  { %135 = vmatpush3.bf16.msra.mxu0 %v147_v2 }
   0x7   :  { %136 = vmatprep.subr.bf16.mxu0 %v151_v0 }
   0xa   :  { %137 = vmatpush3.bf16.msra.mxu0 %v148_v3 }
   0xb   :  { %138 = vmatprep.subr.bf16.mxu0 %v151_v0 }
   0xe   :  { %139 = vmatpush3.bf16.msra.mxu0 %v149_v4 }
  0x11   :  { %141 = vmatmul.mubr.msk.bf16.vlgmr.msra.gmra.mrb[0].mxu0 %vm64_vm1, %v150_v5 }
  0xe4   :  { %v102_v7 = vpop.f32.mrb[0].mxu0 }
  0xe5   :  { %v103_v9 = vadd.f32 %v120_v6, %v102_v7  ;;  %v142_v10 = vpop.f32.mrb[1].mxu0 }
  0xe6   :  { %v105_v11 = vpop.f32.mrb[2].mxu0 }
  0xe7   :  { %v111_v13 = vadd.f32 %v109_v8, %v103_v9  ;;  %v106_v14 = vadd.f32 %v120_v6, %v105_v11  ;;  %v143_v15 = vpop.f32.mrb[3].mxu0 }
  0xe9   :  { %114 = vst.msk [vmem:[%s212_s4] sm:$0xff] %vm113_vm2, %v111_v13  ;;  %v112_v16 = vadd.f32 %v110_v12, %v106_v14 }
  0xeb   :  { %115 = vst.msk [vmem:[%s212_s4 + $0x8] sm:$0xff] %vm113_vm2, %v112_v16 }

// kernel: encoder_forward.15
= control target key start
LH: loop header
LB: loop body
LE: loop exit
PB: predicated region body
PF: predicated region fallthrough
CT: control target
= control target key end

     0   :  { %s1253_s15 = smov 0   ;;  %s1255_s16 = smov 0   ;;  %s1377_s0 = inlined_call_operand.vmem [shape: bf16[2,4,8,8], index: 0, kind: input, shape index: {}]   ;;  %s1378_s1 = inlined_call_operand.vmem [shape: bf16[2,4,8,8], index: 1, kind: input, shape index: {}]   ;;  %s1379_s2 = inlined_call_operand.vmem [shape: bf16[2,4,8,8], index: 2, kind: input, shape index: {}]   ;;  %s1380_s3 = inlined_call_operand.vmem [shape: f32[2,1,8], index: 3, kind: input, shape index: {}]   ;;  %s1381_s4 = inlined_call_operand.vmem [shape: bf16[2,4,8,8], index: 4, kind: output, shape index: {}]  }
   0x1   :  { %s1257_s17 = smov 0  }
   0x2 LB: > { %s33_s18 = sadd.s32 1, %s1219_s16  ;;  %p1060_p0 = scmp.ge.s32.totalorder %s1223_s17, 1  ;;  %s1223_s17 = sphi %s1257_s17, %s14_s17   ;;  %s1219_s16 = sphi %s1255_s16, %s1383_s16   ;;  %s1215_s15 = sphi %s1253_s15, %s1382_s15  }
   0x3   : > { %p35_p1 = scmp.ge.s32.totalorder %s33_s18, 2  ;;  %p231_p2 = scmp.lt.s32.totalorder %s1223_s17, 3 }
   0x5   : > { %s1385_s18 = smov (%p35_p1, %s33_s18), 0  ;;  %p232_p3 = pnand %p1060_p0, %p231_p2 }
   0x6   : > { %p285_p4 = scmp.lt.s32.totalorder (!%p232_p3), %s1215_s15, 1  ;;  %vm336_vm0 = vcmask (!%p232_p3), 64512   ;;  %v1225_v0 = vmov (!%p232_p3), 0.0   ;;  %vm1226_vm1 = vmmov (!%p232_p3), 0   ;;  %v1227_v13 = vmov (!%p232_p3), 0  }
   0x7   : > { %235 = sbr.rel (%p232_p3) target bundleno = 829 (0x33d), region = 36  ;;  %1100 = vmatprep.subr.bf16.mxu0 (!%p232_p3), %v1225_v0  ;;  %337 = vst.msk [vmem:[#allocation4] sm:$0xff] (!%p232_p3), %vm336_vm0, %v1225_v0  ;;  %338 = vst.msk [vmem:[#allocation4 + $0x8] sm:$0xff] (!%p232_p3), %vm336_vm0, %v1225_v0  ;;  %1106 = vmatprep.subr.bf16.mxu1 (!%p232_p3), %v1225_v0  ;;  %vm680_vm2 = vcmask (!%p232_p3), 1043456   ;;  %vm917_vm3 = vcmask (!%p232_p3), 60416  }
   0x8   : > { %339 = vst.msk [vmem:[#allocation4 + $0x10] sm:$0xff] (!%p232_p3), %vm336_vm0, %v1225_v0  ;;  %340 = vst.msk [vmem:[#allocation4 + $0x18] sm:$0xff] (!%p232_p3), %vm336_vm0, %v1225_v0  ;;  %1102 = vmatprep.mubr.msk.bf16.mxu0 (!%p232_p3), %vm1226_vm1, %v1225_v0  ;;  %1108 = vmatprep.mubr.msk.bf16.mxu1 (!%p232_p3), %vm1226_vm1, %v1225_v0 }
   0x9   : > { %1175 = vset.pattern.permute.xlu0 (!%p232_p3), %v1227_v13  ;;  %1176 = vset.pattern.permute.xlu1 (!%p232_p3), %v1227_v13 }
   0xe   : > { %s1387_s15 = smov (!%p285_p4, %s1215_s15), 1 }
   0xf   : > { %s1288_s19 = sshll.u32 %s1387_s15, 4  ;;  %s314_s28 = scalar_lea.vmem %s1380_s3, %s1387_s15 }
  0x10   : > { %s300_s22 = scalar_lea.vmem %s1378_s1, %s1288_s19  ;;  %s292_s25 = scalar_lea.vmem %s1377_s0, %s1288_s19  ;;  %v1073_v16 = vld [vmem:[%s314_s28] ss:$0 sm:$0xff] }
  0x11   : > { %v345_v1 = vld [vmem:[%s300_s22] sm:$0xf]  ;;  %v346_v2 = vld [vmem:[%s300_s22 + $0x4] sm:$0xf]  ;;  %v347_v5 = vld [vmem:[%s300_s22 + $0x8] sm:$0xf]  ;;  %s308_s5 = scalar_lea.vmem %s1379_s2, %s1288_s19  ;;  %s322_s8 = scalar_lea.vmem %s1381_s4, %s1288_s19 }
  0x12   : > { %v354_v3 = vsel %vm336_vm0, %v345_v1, 0  ;;  %v400_v4 = vsel %vm336_vm0, %v346_v2, 0  ;;  %v348_v6 = vld [vmem:[%s300_s22 + $0xc] sm:$0xf]  ;;  %v341_v7 = vld [vmem:[%s292_s25] sm:$0xf] }
  0x13   : > { %1101 = vmatpush3.bf16.xpose.msra.mxu0 %v354_v3  ;;  %1107 = vmatpush3.bf16.xpose.msra.mxu1 %v400_v4  ;;  %v342_v8 = vld [vmem:[%s292_s25 + $0x4] sm:$0xf]  ;;  %v446_v9 = vsel %vm336_vm0, %v347_v5, 0  ;;  %v492_v10 = vsel %vm336_vm0, %v348_v6, 0  ;;  %v343_v11 = vld [vmem:[%s292_s25 + $0x8] sm:$0xf] }
  0x14   : > { %1112 = vmatprep.subr.bf16.mxu0 %v1225_v0  ;;  %1118 = vmatprep.subr.bf16.mxu1 %v1225_v0  ;;  %v344_v12 = vld [vmem:[%s292_s25 + $0xc] sm:$0xf]  ;;  %v673_v47 = vld [vmem:[%s308_s5] sm:$0xf]  ;;  %v674_v49 = vld [vmem:[%s308_s5 + $0x4] sm:$0xf] }
  0x15   : > { %v682_v48 = vsel %vm680_vm2, %v673_v47, 0  ;;  %v728_v50 = vsel %vm680_vm2, %v674_v49, 0  ;;  %v675_v51 = vld [vmem:[%s308_s5 + $0x8] sm:$0xf]  ;;  %v676_v53 = vld [vmem:[%s308_s5 + $0xc] sm:$0xf] }
  0x16   : > { %v774_v52 = vsel %vm680_vm2, %v675_v51, 0  ;;  %v820_v54 = vsel %vm680_vm2, %v676_v53, 0 }
  0x1a   : > { %1103 = vmatmul.mubr.msk.bf16.vlgmr.msra.gmra.mrb[0].mxu0 %vm336_vm0, %v341_v7  ;;  %1109 = vmatmul.mubr.msk.bf16.vlgmr.msra.gmra.mrb[0].mxu1 %vm336_vm0, %v342_v8 }
  0x1b   : > { %1113 = vmatpush3.bf16.xpose.msra.mxu0 %v446_v9  ;;  %1119 = vmatpush3.bf16.xpose.msra.mxu1 %v492_v10 }
  0x1c   : > { %1114 = vmatprep.mubr.msk.bf16.mxu0 %vm1226_vm1, %v1225_v0  ;;  %1120 = vmatprep.mubr.msk.bf16.mxu1 %vm1226_vm1, %v1225_v0 }
  0x1d   : > { %1124 = vmatprep.subr.bf16.mxu0 %v1225_v0  ;;  %1130 = vmatprep.subr.bf16.mxu1 %v1225_v0 }
  0x22   : > { %1115 = vmatmul.mubr.msk.bf16.vlgmr.msra.gmra.mrb[4].mxu0 %vm336_vm0, %v343_v11  ;;  %1121 = vmatmul.mubr.msk.bf16.vlgmr.msra.gmra.mrb[4].mxu1 %vm336_vm0, %v344_v12 }
  0x23   : > { %1126 = vmatprep.mubr.msk.bf16.mxu0 %vm1226_vm1, %v1225_v0  ;;  %1132 = vmatprep.mubr.msk.bf16.mxu1 %vm1226_vm1, %v1225_v0 }
  0x24   : > { %1125 = vmatpush3.bf16.msra.mxu0 %v682_v48  ;;  %1131 = vmatpush3.bf16.msra.mxu1 %v728_v50 }
  0x25   : > { %1136 = vmatprep.subr.bf16.mxu0 %v1225_v0  ;;  %1142 = vmatprep.subr.bf16.mxu1 %v1225_v0 }
  0xed   : > { %v390_v14 = vpop.f32.mrb[0].mxu0  ;;  %v436_v15 = vpop.f32.mrb[0].mxu1 }
  0xee   : > { %v534_v17 = vmul.f32 0.35355338, %v390_v14  ;;  %v1104_v18 = vpop.f32.mrb[1].mxu0  ;;  %v535_v19 = vmul.f32 0.35355338, %v436_v15  ;;  %v1110_v20 = vpop.f32.mrb[1].mxu1 }
  0xef   : > { %v393_v21 = vpop.f32.mrb[2].mxu0  ;;  %v439_v22 = vpop.f32.mrb[2].mxu1 }
  0xf0   : > { %v1105_v23 = vpop.f32.mrb[3].mxu0  ;;  %v1111_v24 = vpop.f32.mrb[3].mxu1  ;;  %v545_v25 = vadd.f32 %v1073_v16, %v534_v17  ;;  %v546_v26 = vadd.f32 %v1073_v16, %v535_v19 }
  0xf2   : > { %v553_v27 = vsel %vm336_vm0, %v545_v25, -inf  ;;  %v556_v28 = vsel %vm336_vm0, %v546_v26, -inf }
  0xf3   : > { %554 = vmax.xlane.f32.xlu0 %v553_v27 }
  0xf5   : > { %v482_v29 = vpop.f32.mrb[4].mxu0  ;;  %v528_v30 = vpop.f32.mrb[4].mxu1 }
  0xf6   : > { %v536_v31 = vmul.f32 0.35355338, %v482_v29  ;;  %v1116_v32 = vpop.f32.mrb[5].mxu0  ;;  %v537_v33 = vmul.f32 0.35355338, %v528_v30  ;;  %v1122_v34 = vpop.f32.mrb[5].mxu1 }
  0xf7   : > { %557 = vmax.xlane.f32.xlu0 %v556_v28  ;;  %v485_v35 = vpop.f32.mrb[6].mxu0  ;;  %v531_v36 = vpop.f32.mrb[6].mxu1 }
  0xf8   : > { %v1117_v37 = vpop.f32.mrb[7].mxu0  ;;  %v1123_v38 = vpop.f32.mrb[7].mxu1  ;;  %v547_v39 = vadd.f32 %v1073_v16, %v536_v31  ;;  %v548_v40 = vadd.f32 %v1073_v16, %v537_v33 }
  0xfa   : > { %v559_v41 = vsel %vm336_vm0, %v547_v39, -inf  ;;  %v562_v42 = vsel %vm336_vm0, %v548_v40, -inf }
  0xfb   : > { %560 = vmax.xlane.f32.xlu1 %v559_v41 }
  0xff   : > { %563 = vmax.xlane.f32.xlu1 %v562_v42 }
 0x180   : > { %v1326_v43 = vpop.xlane.xlu0 %554 }
 0x181   : > { %583 = vperm.xlu0 %1175, %v1326_v43   ;;  %v569_v15 = vsub.f32 -inf, %v1326_v43  ;;  %v641_v43 = vld [vmem:[#allocation4] sm:$0xff] }
 0x183   : > { %v573_v19 = vmul.f32 1.442695, %v569_v15 }
 0x184   : > { %v558_v44 = vpop.xlane.xlu0 %557 }
 0x185   : > { %588 = vperm.xlu1 %1176, %v558_v44   ;;  %v570_v11 = vsub.f32 -inf, %v558_v44 }
 0x187   : > { %v575_v16 = vmul.f32 1.442695, %v570_v11 }
 0x188   : > { %v1329_v45 = vpop.xlane.xlu1 %560 }
 0x189   : > { %593 = vperm.xlu1 %1176, %v1329_v45  }
 0x18c   : > { %v1332_v46 = vpop.xlane.xlu1 %563 }
 0x18d   : > { %598 = vperm.xlu1 %1176, %v1332_v46   ;;  %v572_v21 = vsub.f32 -inf, %v1332_v46  ;;  %v642_v46 = vld [vmem:[#allocation4 + $0x8] sm:$0xff] }
 0x18f   : > { %v579_v22 = vmul.f32 1.442695, %v572_v21 }
 0x200   : > { %v584_v55 = vpop.permute.xlu0 %583 }
 0x201   : > { %v601_v56 = vsub.f32 %v545_v25, %v584_v55  ;;  %v643_v55 = vld [vmem:[#allocation4 + $0x10] sm:$0xff] }
 0x203   : > { %v605_v57 = vmul.f32 1.442695, %v601_v56 }
 0x204   : > { %v589_v58 = vpop.permute.xlu1 %588 }
 0x205   : > { %1177 = vpow2.f32 %v605_v57  ;;  %v602_v59 = vsub.f32 %v546_v26, %v589_v58 }
 0x207   : > { %v607_v60 = vmul.f32 1.442695, %v602_v59 }
 0x208   : > { %v594_v61 = vpop.permute.xlu1 %593 }
 0x209   : > { %1179 = vpow2.f32 %v607_v60  ;;  %v603_v62 = vsub.f32 %v547_v39, %v594_v61 }
 0x20b   : > { %v609_v63 = vmul.f32 1.442695, %v603_v62  ;;  %v644_v62 = vld [vmem:[#allocation4 + $0x18] sm:$0xff] }
 0x20c   : > { %v599_v1 = vpop.permute.xlu1 %598 }
 0x20d   : > { %1181 = vpow2.f32 %v609_v63  ;;  %v604_v2 = vsub.f32 %v548_v40, %v599_v1 }
 0x20f   : > { %v1178_v3 = vpop.eup %1177  ;;  %v611_v4 = vmul.f32 1.442695, %v604_v2 }
 0x210   : > { %v621_v5 = vsel %vm336_vm0, %v1178_v3, 0.0  ;;  %v669_v6 = vpack.c.bf16 %v1178_v3, %v1178_v3 }
 0x211   : > { %1183 = vpow2.f32 %v611_v4  ;;  %622 = vadd.xlane.f32.xlu1 %v621_v5 }
 0x212   : > { %1127 = vmatmul.mubr.msk.bf16.vlgmr.msra.gmra.mrb[8].mxu0 %vm336_vm0, %v669_v6  ;;  %1185 = vpow2.f32 %v575_v16 }
 0x213   : > { %v1180_v7 = vpop.eup %1179  ;;  %1137 = vmatpush3.bf16.msra.mxu0 %v774_v52  ;;  %1138 = vmatprep.mubr.msk.bf16.mxu0 %vm1226_vm1, %v1225_v0  ;;  %1187 = vpow2.f32 %v573_v19 }
 0x214   : > { %v624_v8 = vsel %vm336_vm0, %v1180_v7, 0.0  ;;  %v670_v9 = vpack.c.bf16 %v1180_v7, %v1180_v7 }
 0x215   : > { %625 = vadd.xlane.f32.xlu0 %v624_v8 }
 0x216   : > { %1133 = vmatmul.mubr.msk.bf16.vlgmr.msra.gmra.mrb[8].mxu1 %vm336_vm0, %v670_v9 }
 0x217   : > { %v1182_v10 = vpop.eup %1181  ;;  %1143 = vmatpush3.bf16.msra.mxu1 %v820_v54  ;;  %1144 = vmatprep.mubr.msk.bf16.mxu1 %vm1226_vm1, %v1225_v0  ;;  %v571_v0 = vsub.f32 -inf, %v1329_v45 }
 0x218   : > { %v627_v12 = vsel %vm336_vm0, %v1182_v10, 0.0  ;;  %v671_v13 = vpack.c.bf16 %v1182_v10, %v1182_v10 }
 0x219   : > { %628 = vadd.xlane.f32.xlu1 %v627_v12  ;;  %v577_v20 = vmul.f32 1.442695, %v571_v0 }
 0x21a   : > { %1139 = vmatmul.mubr.msk.bf16.vlgmr.msra.gmra.mrb[12].mxu0 %vm336_vm0, %v671_v13 }
 0x21b   : > { %v1184_v14 = vpop.eup %1183  ;;  %1189 = vpow2.f32 %v577_v20 }
 0x21c   : > { %v630_v17 = vsel %vm336_vm0, %v1184_v14, 0.0  ;;  %v672_v18 = vpack.c.bf16 %v1184_v14, %v1184_v14  ;;  %v1186_v23 = vpop.eup %1185  ;;  %1191 = vpow2.f32 %v579_v22 }
 0x21d   : > { %631 = vadd.xlane.f32.xlu1 %v630_v17  ;;  %v1188_v24 = vpop.eup %1187  ;;  %v618_v30 = vmul.f32 0.0, %v1186_v23 }
 0x21e   : > { %1145 = vmatmul.mubr.msk.bf16.vlgmr.msra.gmra.mrb[12].mxu1 %vm336_vm0, %v672_v18  ;;  %v617_v27 = vmul.f32 0.0, %v1188_v24 }
 0x225   : > { %v1190_v25 = vpop.eup %1189 }
 0x226   : > { %v1192_v26 = vpop.eup %1191  ;;  %v619_v33 = vmul.f32 0.0, %v1190_v25 }
 0x227   : > { %v620_v36 = vmul.f32 0.0, %v1192_v26 }
 0x22b   : > { %652 = vperm.xlu0 %1175, %v1186_v23  }
 0x22e   : > { %647 = vperm.xlu1 %1176, %v1188_v24  }
 0x232   : > { %657 = vperm.xlu1 %1176, %v1190_v25  }
 0x236   : > { %662 = vperm.xlu1 %1176, %v1192_v26  }
 0x29e   : > { %v623_v28 = vpop.xlane.xlu1 %622 }
 0x29f   : > { %v633_v29 = vadd.f32 %v623_v28, %v617_v27 }
 0x2a1   : > { %1193 = vrcp.f32 %v633_v29 }
 0x2a2   : > { %v626_v31 = vpop.xlane.xlu0 %625 }
 0x2a3   : > { %v634_v32 = vadd.f32 %v626_v31, %v618_v30 }
 0x2a5   : > { %1195 = vrcp.f32 %v634_v32 }
 0x2a6   : > { %v629_v34 = vpop.xlane.xlu1 %628 }
 0x2a7   : > { %v635_v35 = vadd.f32 %v629_v34, %v619_v33 }
 0x2a9   : > { %1197 = vrcp.f32 %v635_v35 }
 0x2aa   : > { %v632_v37 = vpop.xlane.xlu1 %631  ;;  %v653_v47 = vpop.permute.xlu0 %652 }
 0x2ab   : > { %v1194_v38 = vpop.eup %1193  ;;  %v636_v39 = vadd.f32 %v632_v37, %v620_v36  ;;  %v666_v53 = vmul.f32 %v653_v47, %v642_v46 }
 0x2ac   : > { %891 = vperm.xlu1 %1176, %v1194_v38  }
 0x2ad   : > { %1199 = vrcp.f32 %v636_v39 }
 0x2ae   : > { %v648_v44 = vpop.permute.xlu1 %647 }
 0x2af   : > { %v1196_v40 = vpop.eup %1195  ;;  %v665_v45 = vmul.f32 %v648_v44, %v641_v43 }
 0x2b0   : > { %896 = vperm.xlu0 %1175, %v1196_v40  }
 0x2b2   : > { %v658_v51 = vpop.permute.xlu1 %657 }
 0x2b3   : > { %v1198_v41 = vpop.eup %1197  ;;  %v667_v60 = vmul.f32 %v658_v51, %v643_v55 }
 0x2b4   : > { %901 = vperm.xlu1 %1176, %v1198_v41  }
 0x2b6   : > { %v663_v63 = vpop.permute.xlu1 %662 }
 0x2b7   : > { %v1200_v42 = vpop.eup %1199  ;;  %v668_v5 = vmul.f32 %v663_v63, %v644_v62 }
 0x2b8   : > { %906 = vperm.xlu0 %1175, %v1200_v42  }
 0x2e5   : > { %v718_v48 = vpop.f32.mrb[8].mxu0 }
 0x2e6   : > { %v862_v49 = vadd.f32 %v718_v48, %v665_v45  ;;  %v1128_v50 = vpop.f32.mrb[9].mxu0 }
 0x2e7   : > { %v721_v52 = vpop.f32.mrb[10].mxu0 }
 0x2e8   : > { %866 = vst.msk [vmem:[#allocation4] sm:$0xff] %vm336_vm0, %v862_v49  ;;  %v1129_v54 = vpop.f32.mrb[11].mxu0 }
 0x2e9   : > { %v764_v56 = vpop.f32.mrb[8].mxu1 }
 0x2ea   : > { %v863_v57 = vadd.f32 %v764_v56, %v666_v53  ;;  %v1134_v58 = vpop.f32.mrb[9].mxu1 }
 0x2eb   : > { %v767_v59 = vpop.f32.mrb[10].mxu1 }
 0x2ec   : > { %867 = vst.msk [vmem:[#allocation4 + $0x8] sm:$0xff] %vm336_vm0, %v863_v57  ;;  %v1135_v61 = vpop.f32.mrb[11].mxu1 }
 0x2ed   : > { %v810_v1 = vpop.f32.mrb[12].mxu0 }
 0x2ee   : > { %v864_v2 = vadd.f32 %v810_v1, %v667_v60  ;;  %v1140_v3 = vpop.f32.mrb[13].mxu0 }
 0x2ef   : > { %v813_v4 = vpop.f32.mrb[14].mxu0  ;;  %v885_v13 = vld [vmem:[#allocation4] sm:$0xff] }
 0x2f0   : > { %868 = vst.msk [vmem:[#allocation4 + $0x10] sm:$0xff] %vm336_vm0, %v864_v2  ;;  %v1141_v6 = vpop.f32.mrb[15].mxu0 }
 0x2f1   : > { %v856_v7 = vpop.f32.mrb[12].mxu1 }
 0x2f2   : > { %v865_v8 = vadd.f32 %v856_v7, %v668_v5  ;;  %v1146_v9 = vpop.f32.mrb[13].mxu1 }
 0x2f3   : > { %v859_v10 = vpop.f32.mrb[14].mxu1  ;;  %v886_v16 = vld [vmem:[#allocation4 + $0x8] sm:$0xff] }
 0x2f4   : > { %869 = vst.msk [vmem:[#allocation4 + $0x18] sm:$0xff] %vm336_vm0, %v865_v8  ;;  %v1147_v11 = vpop.f32.mrb[15].mxu1 }
 0x2f7   : > { %v887_v20 = vld [vmem:[#allocation4 + $0x10] sm:$0xff] }
 0x2fb   : > { %v888_v24 = vld [vmem:[#allocation4 + $0x18] sm:$0xff] }
 0x32b   : > { %v892_v12 = vpop.permute.xlu1 %891 }
 0x32c   : > { %v909_v14 = vmul.f32 %v892_v12, %v885_v13 }
 0x32e   : > { %v913_v15 = vpack.c.bf16 %v909_v14, %v909_v14 }
 0x32f   : > { %v897_v17 = vpop.permute.xlu0 %896 }
 0x330   : > { %918 = vst.msk [vmem:[%s322_s8] sm:$0xf] %vm917_vm3, %v913_v15  ;;  %v910_v18 = vmul.f32 %v897_v17, %v886_v16 }
 0x332   : > { %v914_v19 = vpack.c.bf16 %v910_v18, %v910_v18 }
 0x333   : > { %v902_v0 = vpop.permute.xlu1 %901 }
 0x334   : > { %919 = vst.msk [vmem:[%s322_s8 + $0x4] sm:$0xf] %vm917_vm3, %v914_v19  ;;  %v911_v21 = vmul.f32 %v902_v0, %v887_v20 }
 0x336   : > { %v915_v22 = vpack.c.bf16 %v911_v21, %v911_v21 }
 0x337   : > { %v907_v23 = vpop.permute.xlu0 %906 }
 0x338   : > { %920 = vst.msk [vmem:[%s322_s8 + $0x8] sm:$0xf] %vm917_vm3, %v915_v22  ;;  %v912_v25 = vmul.f32 %v907_v23, %v888_v24 }
 0x33a   : > { %v916_v26 = vpack.c.bf16 %v912_v25, %v912_v25 }
 0x33c   : > { %921 = vst.msk [vmem:[%s322_s8 + $0xc] sm:$0xf] %vm917_vm3, %v916_v26 }
 0x33d PF: > { %s14_s17 = sadd.s32 1, %s1223_s17   ;;  %s1382_s15 = smov %s1219_s16 }
 0x33e   : > { %p11_p5 = scmp.ge.s32.totalorder %s14_s17, 4   ;;  %s1383_s16 = smov %s1385_s18 }
 0x340   :  { %13 = sbr.rel (!%p11_p5) target bundleno = 2 (0x2), region = 83 }

// kernel: encoder_forward.23
= control target key start
LH: loop header
LB: loop body
LE: loop exit
PB: predicated region body
PF: predicated region fallthrough
CT: control target
= control target key end

     0   :  { %v191_v1 = vmov 0.0   ;;  %vm192_vm0 = vmmov 0   ;;  %s257_s0 = inlined_call_operand.vmem [shape: bf16[16,64], index: 0, kind: input, shape index: {}]   ;;  %s258_s1 = inlined_call_operand.vmem [shape: bf16[64,32], index: 1, kind: input, shape index: {}]   ;;  %s259_s2 = inlined_call_operand.vmem [shape: f32[1,32], index: 2, kind: input, shape index: {}]   ;;  %s260_s3 = inlined_call_operand.vmem [shape: f32[16,32], index: 3, kind: input, shape index: {}]   ;;  %s261_s4 = inlined_call_operand.hbm [shape: f32[16,32], index: 4, kind: output, shape index: {}]  }
   0x1   :  { %v162_v0 = vld [vmem:[%s258_s1] sm:$0xff]   ;;  %145 = vmatprep.subr.bf16.mxu0 %v191_v1  ;;  %v163_v2 = vld [vmem:[%s258_s1 + $0x8] sm:$0xff]   ;;  %153 = vmatprep.mubr.msk.bf16.mxu0 %vm192_vm0, %v191_v1 }
   0x2   :  { %146 = vmatpush3.bf16.msra.mxu0 %v162_v0 }
   0x3   :  { %147 = vmatprep.subr.bf16.mxu0 %v191_v1 }
   0x4   :  { %9 = vsyncpa [#allocation3], 0  ;;  %v164_v3 = vld [vmem:[%s258_s1 + $0x10] sm:$0xff]   ;;  %v165_v4 = vld [vmem:[%s258_s1 + $0x18] sm:$0xff]   ;;  %vm65_vm1 = vcmask 523264   ;;  %s193_s1 = smov [#allocation2]  }
   0x5   :  { %v166_v5 = vld [vmem:[%s257_s0] sm:$0xff]   ;;  %s122_s29 = sshll.u32 %s193_s1, 4  ;;  %vm114_vm2 = vcmask 261120   ;;  %v111_v12 = vld [vmem:[%s260_s3 + $0x8] sm:$0xff]  ;;  %s123_s29 = int_to_ptr.vmem [resolvable:$true] %s122_s29 }
   0x6   :  { %148 = vmatpush3.bf16.msra.mxu0 %v163_v2  ;;  %v133_v6 = vld [vmem:[%s259_s2] ss:$0 sm:$0xff]  ;;  %s167_s2 = scalar_lea.vmem %s123_s29, 256  ;;  %p172_p1 = scmp.lt.s32.totalorder %s123_s29, %s123_s29 }
   0x7   :  { %149 = vmatprep.subr.bf16.mxu0 %v191_v1  ;;  %v110_v8 = vld [vmem:[%s260_s3] sm:$0xff]  ;;  %p168_p0 = scmp.ne.s32.totalorder %s123_s29, %s167_s2  ;;  %p173_p2 = scmp.lt.s32.totalorder %s167_s2, %s167_s2 }
   0x9   :  { %p174_p3 = por %p173_p2, %p172_p1 }
   0xa   :  { %150 = vmatpush3.bf16.msra.mxu0 %v164_v3 }
   0xb   :  { %151 = vmatprep.subr.bf16.mxu0 %v191_v1  ;;  %p175_p4 = pnand %p174_p3, %p168_p0 }
   0xe   :  { %152 = vmatpush3.bf16.msra.mxu0 %v165_v4 }
  0x11   :  { %154 = vmatmul.mubr.msk.bf16.vlgmr.msra.gmra.mrb[0].mxu0 %vm65_vm1, %v166_v5 }
  0xe4   :  { %v103_v7 = vpop.f32.mrb[0].mxu0 }
  0xe5   :  { %v104_v9 = vadd.f32 %v133_v6, %v103_v7  ;;  %v155_v10 = vpop.f32.mrb[1].mxu0 }
  0xe6   :  { %v106_v11 = vpop.f32.mrb[2].mxu0 }
  0xe7   :  { %v112_v13 = vadd.f32 %v110_v8, %v104_v9  ;;  %v107_v14 = vadd.f32 %v133_v6, %v106_v11  ;;  %v156_v15 = vpop.f32.mrb[3].mxu0 }
  0xe9   :  { %115 = vst.msk [vmem:[#allocation2] sm:$0xff] %vm114_vm2, %v112_v13  ;;  %v113_v16 = vadd.f32 %v111_v12, %v107_v14 }
  0xeb   :  { %116 = vst.msk [vmem:[#allocation2 + $0x8] sm:$0xff] %vm114_vm2, %v113_v16 }
  0xec   :  { %178 = shalt.err (!%p175_p4)
}
  0xed   :  { %s179_s7 = scalar_lea.hbm %s261_s4, 256 }
  0xee   :  { %p180_p5 = scmp.ne.s32.totalorder %s261_s4, %s179_s7  ;;  %p183_p6 = scmp.lt.u32.totalorder %s179_s7, %s261_s4 }
  0xf0   :  { %p185_p7 = pnand %p183_p6, %p180_p5 }
  0xf2   :  { %188 = shalt.err (!%p185_p7)
}
  0xf3   :  { %s194_s11 = smov 128   ;;  %s195_s12 = smov 8  }
  0xf4   :  { %128 = dma.vmem_to_hbm [thread:$0]  %s123_s29, 256, %s261_s4, [#allocation3], %s194_s11, %s194_s11, %s195_s12  }
  0xf5   :  { %189 = dma.done.wait [#allocation3], 256  }
  0xf6   :  { %190 = vsyncadd [#allocation3], 4294967040 }
  0xf7   :  { %132 = vsyncpa [#allocation3], 1 }

</bundles_post_ra>
